<compile_context>
chip_gen: v7x
topology: tpu7x:2x2x1
jax: 0.10.0
libtpu: 0.0.40
codegen_flags: <defaults>
</compile_context>

<pallas_src>
import functools

import jax
import jax.numpy as jnp
from jax.experimental import pallas as pl
from jax.experimental.pallas import tpu as pltpu

# ----------------------------- problem sizes --------------------------------
BS = 8          # batch (multiple of 8 sublanes -> unmasked loads/stores)
K = 3           # number of candidates (module default k=3)
ML = 32         # max_seq_len (small demo size)
HS = 128        # hidden_size
HID = 512       # mlp1 output dim (fixed by the module)
KPAD = 128      # lane-padded classifier width (real classes = K)
VOCAB = 100
NEG_PAD = -1e9  # bias for padded logits columns (exp() underflows to exactly 0)


# =============================================================================
# Single fused kernel:
#   masked-mean "CLS" pooling  ->  mlp1 + relu  ->  mlp2 (= x_feature)
#   -> relu -> mlp3 (lane-padded)  ->  cross-entropy loss
# Whole working set (< 1 MiB) is VMEM-resident; no grid.
# =============================================================================
def classify_kernel(emb_ref, mask_ref, w1_ref, b1_ref, w2_ref, b2_ref,
                    w3_ref, b3_ref, tgt_ref, logits_ref, feat_ref, loss_ref):
    emb = emb_ref[...]                                    # [BS, K, ML, HS]
    mask = mask_ref[...]                                  # [BS, K, ML, 1]

    # TODO(synk): stand-in for BERT last_hidden_state[:, 0, :] (masked mean pool).
    denom = jnp.maximum(jnp.sum(mask, axis=2), 1.0)       # [BS, K, 1]
    pooled = jnp.sum(emb * mask, axis=2) / denom          # [BS, K, HS]

    # bert_output.reshape(batch, k*hidden): lane-axis concat of 128-wide chunks
    # (each chunk is a full 128-lane multiple -> no cross-lane shuffles).
    cls = jnp.concatenate([pooled[:, j, :] for j in range(K)], axis=1)  # [BS, K*HS]

    # mlp1 + relu  (one K=384 MXU push)
    h1 = jnp.dot(cls, w1_ref[...], preferred_element_type=jnp.float32) + b1_ref[...]
    h1 = jnp.maximum(h1, 0.0)                             # [BS, HID]

    # mlp2 -> x_feature
    feat = jnp.dot(h1, w2_ref[...], preferred_element_type=jnp.float32) + b2_ref[...]
    feat_ref[...] = feat                                  # [BS, HS]

    # relu -> mlp3 (lane-padded to 128: padded cols get weight 0 and bias -1e9)
    h2 = jnp.maximum(feat, 0.0)
    logits = jnp.dot(h2, w3_ref[...], preferred_element_type=jnp.float32) + b3_ref[...]
    logits_ref[...] = logits                              # [BS, KPAD] lane-dense

    # CrossEntropyLoss (mean reduction). Padded columns contribute exp(-1e9)=0
    # and never win the row max, so this equals CE over the first K columns.
    m = jnp.max(logits, axis=1, keepdims=True)                              # [BS, 1]
    lse = m + jnp.log(jnp.sum(jnp.exp(logits - m), axis=1, keepdims=True))  # [BS, 1]
    nll = lse - jnp.sum(tgt_ref[...] * logits, axis=1, keepdims=True)       # [BS, 1]
    loss_ref[...] = jnp.sum(nll, axis=0, keepdims=True) / nll.shape[0]      # [1, 1]


def run_classify_kernel(emb, mask, tgt, p):
    bs = emb.shape[0]
    out_shapes = (jax.ShapeDtypeStruct((bs, KPAD), jnp.float32),  # padded logits
                  jax.ShapeDtypeStruct((bs, HS), jnp.float32),    # x_feature
                  jax.ShapeDtypeStruct((1, 1), jnp.float32))      # CE loss
    return pl.pallas_call(classify_kernel, out_shape=out_shapes)(
        emb, mask, p["w1"], p["b1"], p["w2"], p["b2"], p["w3p"], p["b3p"], tgt)


# ----------------------------- forward wrapper --------------------------------
def classify_forward(params, input_ids, att_masks, vec_idx_arr,
                     sen_vec_arr, des_vec_arr, marked_e1, marked_e2,
                     target_idx_arr=None):
    # sen_vec_arr / des_vec_arr / marked_e1 / marked_e2 are accepted but never used
    # by the reference forward.
    del sen_vec_arr, des_vec_arr, marked_e1, marked_e2
    bs = input_ids.shape[0]

    # TODO(synk): BERT encoder replaced by deterministic embedding lookup.
    emb = params["emb"][input_ids]                         # [bs, k, ml, hs]
    mask = att_masks.astype(jnp.float32)[..., None]        # [bs, k, ml, 1]

    if target_idx_arr is None:
        tgt = jnp.zeros((bs, KPAD), jnp.float32)           # loss output unused
    else:
        tgt = jax.nn.one_hot(target_idx_arr, KPAD, dtype=jnp.float32)

    logits_p, x_feature, loss = run_classify_kernel(emb, mask, tgt, params)

    if target_idx_arr is not None:
        return loss[0, 0]

    logits = logits_p[:, :K]
    max_idx = jnp.argmax(logits, axis=1)
    converted_max_idx = vec_idx_arr[jnp.arange(bs), max_idx]
    return converted_max_idx, x_feature


# ----------------------------- pure-JAX reference -----------------------------
def reference_loss(params, input_ids, att_masks, target_idx_arr):
    emb = params["emb"][input_ids]
    mask = att_masks.astype(jnp.float32)[..., None]
    pooled = jnp.sum(emb * mask, axis=2) / jnp.maximum(jnp.sum(mask, axis=2), 1.0)
    cls = pooled.reshape(pooled.shape[0], K * HS)
    hi = jax.lax.Precision.HIGHEST
    h1 = jax.nn.relu(jnp.dot(cls, params["w1"], precision=hi) + params["b1"])
    feat = jnp.dot(h1, params["w2"], precision=hi) + params["b2"]
    logits = jnp.dot(jax.nn.relu(feat), params["w3p"][:, :K], precision=hi) \
        + params["b3p"][:, :K]
    lse = jax.nn.logsumexp(logits, axis=1)
    nll = lse - jnp.take_along_axis(logits, target_idx_arr[:, None], axis=1)[:, 0]
    return jnp.mean(nll), feat


# ----------------------------- parameter init --------------------------------
def init_params(key):
    ks = jax.random.split(key, 5)

    def lin(k, fi, fo, scale=0.05):
        return jax.random.normal(k, (fi, fo), jnp.float32) * scale

    w3 = lin(ks[4], HS, K)
    w3p = jnp.zeros((HS, KPAD), jnp.float32).at[:, :K].set(w3)
    b3p = jnp.full((1, KPAD), NEG_PAD, jnp.float32).at[:, :K].set(0.0)
    return {
        "emb": jax.random.normal(ks[0], (VOCAB, HS), jnp.float32) * 0.5,
        "w1": lin(ks[1], K * HS, HID), "b1": jnp.zeros((1, HID), jnp.float32),
        "w2": lin(ks[2], HID, HS), "b2": jnp.zeros((1, HS), jnp.float32),
        "w3p": w3p, "b3p": b3p,
    }


if __name__ == "__main__":
    key = jax.random.PRNGKey(0)
    kp, kid, kam, kvec, ktgt = jax.random.split(key, 5)

    params = init_params(kp)

    input_ids = jax.random.randint(kid, (BS, K, ML), 0, VOCAB)
    lens = jax.random.randint(kam, (BS, K), 1, ML + 1)
    att_masks = (jnp.arange(ML)[None, None, :] < lens[..., None]).astype(jnp.int32)
    vec_idx_arr = jax.random.randint(kvec, (BS, K), 0, 1000)
    target_idx_arr = jax.random.randint(ktgt, (BS,), 0, K)

    # unused-by-forward extras, kept only for signature parity with the module
    sen_vec_arr = jnp.zeros((BS, HS), jnp.float32)
    des_vec_arr = jnp.zeros((BS, HS), jnp.float32)
    marked_e1 = jnp.zeros((BS, ML), jnp.float32)
    marked_e2 = jnp.zeros((BS, ML), jnp.float32)

    train_step = jax.jit(functools.partial(
        classify_forward, params,
        sen_vec_arr=sen_vec_arr, des_vec_arr=des_vec_arr,
        marked_e1=marked_e1, marked_e2=marked_e2))
    infer_step = jax.jit(functools.partial(
        classify_forward, params,
        sen_vec_arr=sen_vec_arr, des_vec_arr=des_vec_arr,
        marked_e1=marked_e1, marked_e2=marked_e2, target_idx_arr=None))

    # training branch (target provided -> loss)
    loss = jax.block_until_ready(
        train_step(input_ids, att_masks, vec_idx_arr, target_idx_arr=target_idx_arr))
    # inference branch (no target -> (converted_max_idx, x_feature))
    pred_idx, feat = infer_step(input_ids, att_masks, vec_idx_arr)
    pred_idx = jax.block_until_ready(pred_idx)
    feat = jax.block_until_ready(feat)

    ref_loss, ref_feat = reference_loss(params, input_ids, att_masks, target_idx_arr)

    assert jnp.isfinite(loss), "loss is not finite"
    assert jnp.all(jnp.isfinite(feat)), "x_feature is not finite"
    assert abs(float(loss) - float(ref_loss)) < 1e-2, (loss, ref_loss)
    assert float(jnp.max(jnp.abs(feat - ref_feat))) < 1e-2, "x_feature mismatch"
    print("KERNEL_OK")
</pallas_src>

<mosaic_0001>
module attributes {stable_mosaic.version = 11 : i64} {
  func.func @classify_kernel(%arg0: memref<8x3x32x128xf32, #tpu.memory_space<vmem>>, %arg1: memref<8x3x32x1xf32, #tpu.memory_space<vmem>>, %arg2: memref<384x512xf32, #tpu.memory_space<vmem>>, %arg3: memref<1x512xf32, #tpu.memory_space<vmem>>, %arg4: memref<512x128xf32, #tpu.memory_space<vmem>>, %arg5: memref<1x128xf32, #tpu.memory_space<vmem>>, %arg6: memref<128x128xf32, #tpu.memory_space<vmem>>, %arg7: memref<1x128xf32, #tpu.memory_space<vmem>>, %arg8: memref<8x128xf32, #tpu.memory_space<vmem>>, %arg9: memref<8x128xf32, #tpu.memory_space<vmem>>, %arg10: memref<8x128xf32, #tpu.memory_space<vmem>>, %arg11: memref<1x1xf32, #tpu.memory_space<vmem>>) attributes {dimension_semantics = [], scalar_prefetch = 0 : i64, scratch_operands = 0 : i64, tpu.core_type = #tpu.core_type<tc>} {
    %c0 = arith.constant 0 : index
    %c0_0 = arith.constant 0 : index
    %c0_1 = arith.constant 0 : index
    %c0_2 = arith.constant 0 : index
    %0 = vector.load %arg0[%c0, %c0_0, %c0_1, %c0_2] : memref<8x3x32x128xf32, #tpu.memory_space<vmem>>, vector<8x3x32x128xf32>
    %c0_3 = arith.constant 0 : index
    %c0_4 = arith.constant 0 : index
    %c0_5 = arith.constant 0 : index
    %c0_6 = arith.constant 0 : index
    %1 = vector.load %arg1[%c0_3, %c0_4, %c0_5, %c0_6] : memref<8x3x32x1xf32, #tpu.memory_space<vmem>>, vector<8x3x32x1xf32>
    %cst = arith.constant dense<0.000000e+00> : vector<8x3x1xf32>
    %2 = vector.multi_reduction <add>, %1, %cst [2] : vector<8x3x32x1xf32> to vector<8x3x1xf32>
    %cst_7 = arith.constant 1.000000e+00 : f32
    %3 = vector.broadcast %cst_7 : f32 to vector<8x3x1xf32>
    %4 = arith.maximumf %2, %3 : vector<8x3x1xf32>
    %5 = vector.broadcast %1 : vector<8x3x32x1xf32> to vector<8x3x32x128xf32>
    %6 = arith.mulf %0, %5 : vector<8x3x32x128xf32>
    %cst_8 = arith.constant dense<0.000000e+00> : vector<8x3x128xf32>
    %7 = vector.multi_reduction <add>, %6, %cst_8 [2] : vector<8x3x32x128xf32> to vector<8x3x128xf32>
    %8 = vector.broadcast %4 : vector<8x3x1xf32> to vector<8x3x128xf32>
    %9 = arith.divf %7, %8 : vector<8x3x128xf32>
    %10 = vector.extract_strided_slice %9 {offsets = [0, 0, 0], sizes = [8, 1, 128], strides = [1, 1, 1]} : vector<8x3x128xf32> to vector<8x1x128xf32>
    %11 = vector.shape_cast %10 : vector<8x1x128xf32> to vector<8x128xf32>
    %12 = vector.extract_strided_slice %9 {offsets = [0, 1, 0], sizes = [8, 1, 128], strides = [1, 1, 1]} : vector<8x3x128xf32> to vector<8x1x128xf32>
    %13 = vector.shape_cast %12 : vector<8x1x128xf32> to vector<8x128xf32>
    %14 = vector.extract_strided_slice %9 {offsets = [0, 2, 0], sizes = [8, 1, 128], strides = [1, 1, 1]} : vector<8x3x128xf32> to vector<8x1x128xf32>
    %15 = vector.shape_cast %14 : vector<8x1x128xf32> to vector<8x128xf32>
    %16 = tpu.concatenate %11, %13, %15 in 1 : vector<8x128xf32>, vector<8x128xf32>, vector<8x128xf32> -> vector<8x384xf32>
    %c0_9 = arith.constant 0 : index
    %c0_10 = arith.constant 0 : index
    %17 = vector.load %arg2[%c0_9, %c0_10] : memref<384x512xf32, #tpu.memory_space<vmem>>, vector<384x512xf32>
    %cst_11 = arith.constant dense<0.000000e+00> : vector<8x512xf32>
    %18 = tpu.matmul %16, %17, %cst_11 {dimension_numbers = #tpu.dot_dimension_numbers<[1], [0], [0], [1], [0, 0, 1, 1], [], []>} : vector<8x384xf32>, vector<384x512xf32>, vector<8x512xf32> -> vector<8x512xf32>
    %c0_12 = arith.constant 0 : index
    %c0_13 = arith.constant 0 : index
    %19 = vector.load %arg3[%c0_12, %c0_13] : memref<1x512xf32, #tpu.memory_space<vmem>>, vector<1x512xf32>
    %20 = vector.broadcast %19 : vector<1x512xf32> to vector<8x512xf32>
    %21 = arith.addf %18, %20 : vector<8x512xf32>
    %cst_14 = arith.constant 0.000000e+00 : f32
    %22 = vector.broadcast %cst_14 : f32 to vector<8x512xf32>
    %23 = arith.maximumf %21, %22 : vector<8x512xf32>
    %c0_15 = arith.constant 0 : index
    %c0_16 = arith.constant 0 : index
    %24 = vector.load %arg4[%c0_15, %c0_16] : memref<512x128xf32, #tpu.memory_space<vmem>>, vector<512x128xf32>
    %cst_17 = arith.constant dense<0.000000e+00> : vector<8x128xf32>
    %25 = tpu.matmul %23, %24, %cst_17 {dimension_numbers = #tpu.dot_dimension_numbers<[1], [0], [0], [1], [0, 0, 1, 1], [], []>} : vector<8x512xf32>, vector<512x128xf32>, vector<8x128xf32> -> vector<8x128xf32>
    %c0_18 = arith.constant 0 : index
    %c0_19 = arith.constant 0 : index
    %26 = vector.load %arg5[%c0_18, %c0_19] : memref<1x128xf32, #tpu.memory_space<vmem>>, vector<1x128xf32>
    %27 = vector.broadcast %26 : vector<1x128xf32> to vector<8x128xf32>
    %28 = arith.addf %25, %27 : vector<8x128xf32>
    %c0_20 = arith.constant 0 : index
    %c0_21 = arith.constant 0 : index
    %29 = vector.load %arg10[%c0_20, %c0_21] : memref<8x128xf32, #tpu.memory_space<vmem>>, vector<8x128xf32>
    tpu.vector_store %arg10[%c0_20, %c0_21], %28 {strides = array<i32>} : memref<8x128xf32, #tpu.memory_space<vmem>>, vector<8x128xf32>,
    %cst_22 = arith.constant 0.000000e+00 : f32
    %30 = vector.broadcast %cst_22 : f32 to vector<8x128xf32>
    %31 = arith.maximumf %28, %30 : vector<8x128xf32>
    %c0_23 = arith.constant 0 : index
    %c0_24 = arith.constant 0 : index
    %32 = vector.load %arg6[%c0_23, %c0_24] : memref<128x128xf32, #tpu.memory_space<vmem>>, vector<128x128xf32>
    %cst_25 = arith.constant dense<0.000000e+00> : vector<8x128xf32>
    %33 = tpu.matmul %31, %32, %cst_25 {dimension_numbers = #tpu.dot_dimension_numbers<[1], [0], [0], [1], [0, 0, 1, 1], [], []>} : vector<8x128xf32>, vector<128x128xf32>, vector<8x128xf32> -> vector<8x128xf32>
    %c0_26 = arith.constant 0 : index
    %c0_27 = arith.constant 0 : index
    %34 = vector.load %arg7[%c0_26, %c0_27] : memref<1x128xf32, #tpu.memory_space<vmem>>, vector<1x128xf32>
    %35 = vector.broadcast %34 : vector<1x128xf32> to vector<8x128xf32>
    %36 = arith.addf %33, %35 : vector<8x128xf32>
    %c0_28 = arith.constant 0 : index
    %c0_29 = arith.constant 0 : index
    %37 = vector.load %arg9[%c0_28, %c0_29] : memref<8x128xf32, #tpu.memory_space<vmem>>, vector<8x128xf32>
    tpu.vector_store %arg9[%c0_28, %c0_29], %36 {strides = array<i32>} : memref<8x128xf32, #tpu.memory_space<vmem>>, vector<8x128xf32>,
    %cst_30 = arith.constant dense<0xFF800000> : vector<8xf32>
    %38 = vector.multi_reduction <maximumf>, %36, %cst_30 [1] : vector<8x128xf32> to vector<8xf32>
    %39 = vector.shape_cast %38 : vector<8xf32> to vector<8x1xf32>
    %40 = vector.broadcast %39 : vector<8x1xf32> to vector<8x128xf32>
    %41 = arith.subf %36, %40 : vector<8x128xf32>
    %42 = math.exp %41 : vector<8x128xf32>
    %cst_31 = arith.constant dense<0.000000e+00> : vector<8xf32>
    %43 = vector.multi_reduction <add>, %42, %cst_31 [1] : vector<8x128xf32> to vector<8xf32>
    %44 = vector.shape_cast %43 : vector<8xf32> to vector<8x1xf32>
    %45 = math.log %44 : vector<8x1xf32>
    %46 = arith.addf %39, %45 : vector<8x1xf32>
    %c0_32 = arith.constant 0 : index
    %c0_33 = arith.constant 0 : index
    %47 = vector.load %arg8[%c0_32, %c0_33] : memref<8x128xf32, #tpu.memory_space<vmem>>, vector<8x128xf32>
    %48 = arith.mulf %47, %36 : vector<8x128xf32>
    %cst_34 = arith.constant dense<0.000000e+00> : vector<8xf32>
    %49 = vector.multi_reduction <add>, %48, %cst_34 [1] : vector<8x128xf32> to vector<8xf32>
    %50 = vector.shape_cast %49 : vector<8xf32> to vector<8x1xf32>
    %51 = arith.subf %46, %50 : vector<8x1xf32>
    %cst_35 = arith.constant dense<0.000000e+00> : vector<1xf32>
    %52 = vector.multi_reduction <add>, %51, %cst_35 [0] : vector<8x1xf32> to vector<1xf32>
    %53 = vector.shape_cast %52 : vector<1xf32> to vector<1x1xf32>
    %cst_36 = arith.constant 8.000000e+00 : f32
    %54 = vector.broadcast %cst_36 : f32 to vector<1x1xf32>
    %55 = arith.divf %53, %54 : vector<1x1xf32>
    %c0_37 = arith.constant 0 : index
    %c0_38 = arith.constant 0 : index
    %56 = vector.load %arg11[%c0_37, %c0_38] : memref<1x1xf32, #tpu.memory_space<vmem>>, vector<1x1xf32>
    tpu.vector_store %arg11[%c0_37, %c0_38], %55 {strides = array<i32>} : memref<1x1xf32, #tpu.memory_space<vmem>>, vector<1x1xf32>,
    return
  }
}

</mosaic_0001>

<bundles_post_ra>
// kernel: classify_forward.1
= control target key start
LH: loop header
LB: loop body
LE: loop exit
PB: predicated region body
PF: predicated region fallthrough
CT: control target
= control target key end

     0   :  { %17 = vsyncpa [#allocation3], 0  ;;  %vm229_vm0 = vcmask 7168   ;;  %v2999_v3 = vmov 0   ;;  %s5149_s0 = inlined_call_operand.vmem [shape: f32[8,3,32,128], index: 0, kind: input, shape index: {}]   ;;  %s5150_s1 = inlined_call_operand.vmem [shape: f32[8,3,32,1], index: 1, kind: input, shape index: {}]   ;;  %s5151_s2 = inlined_call_operand.vmem [shape: f32[384,512], index: 2, kind: input, shape index: {}]   ;;  %s5152_s3 = inlined_call_operand.vmem [shape: f32[1,512], index: 3, kind: input, shape index: {}]   ;;  %s5153_s4 = inlined_call_operand.vmem [shape: f32[512,128], index: 4, kind: input, shape index: {}]   ;;  %s5154_s5 = inlined_call_operand.vmem [shape: f32[1,128], index: 5, kind: input, shape index: {}]   ;;  %s5155_s6 = inlined_call_operand.vmem [shape: f32[128,128], index: 6, kind: input, shape index: {}]   ;;  %s5156_s7 = inlined_call_operand.vmem [shape: f32[1,128], index: 7, kind: input, shape index: {}]   ;;  %s5157_s8 = inlined_call_operand.vmem [shape: f32[8,128], index: 8, kind: input, shape index: {}]   ;;  %s5158_s9 = inlined_call_operand.hbm [shape: f32[8,128], index: 9, kind: output, shape index: {0}]   ;;  %s5159_s10 = inlined_call_operand.hbm [shape: f32[8,128], index: 10, kind: output, shape index: {1}]   ;;  %s5160_s11 = inlined_call_operand.hbm [shape: f32[1,1], index: 11, kind: output, shape index: {2}]  }
   0x1   :  { %v149_v0 = vld [vmem:[%s5150_s1 + $0x80] sm:$0xff]  ;;  %v150_v2 = vld [vmem:[%s5150_s1 + $0x88] sm:$0xff]  ;;  %2876 = vset.pattern.permute.xlu1 %v2999_v3  ;;  %2875 = vset.pattern.permute.xlu0 %v2999_v3  ;;  %v151_v22 = vld [vmem:[%s5150_s1 + $0x90] sm:$0xff] }
   0x2   :  { %v137_v1 = vld [vmem:[%s5150_s1 + $0x20] sm:$0xff]  ;;  %v282_v4 = vsel %vm229_vm0, %v149_v0, 0.0  ;;  %v283_v6 = vsel %vm229_vm0, %v150_v2, 0.0  ;;  %v138_v7 = vld [vmem:[%s5150_s1 + $0x28] sm:$0xff]  ;;  %648 = vperm.xlu1 %2876, %v149_v0   ;;  %v285_v26 = vsel %vm229_vm0, %v151_v22, 0.0  ;;  %v139_v27 = vld [vmem:[%s5150_s1 + $0x30] sm:$0xff] }
   0x3   :  { %v243_v5 = vsel %vm229_vm0, %v137_v1, 0.0  ;;  %v134_v8 = vld [vmem:[%s5150_s1 + $0x8] sm:$0xff]  ;;  %v133_v9 = vld [vmem:[%s5150_s1] sm:$0xff]  ;;  %588 = vperm.xlu0 %2875, %v137_v1   ;;  %v284_v10 = vadd.f32 %v283_v6, %v282_v4  ;;  %v244_v11 = vsel %vm229_vm0, %v138_v7, 0.0  ;;  %v246_v31 = vsel %vm229_vm0, %v139_v27, 0.0  ;;  %v147_v40 = vld [vmem:[%s5150_s1 + $0x70] sm:$0xff] }
   0x4   :  { %v231_v12 = vsel %vm229_vm0, %v134_v8, 0.0  ;;  %v230_v13 = vsel %vm229_vm0, %v133_v9, 0.0  ;;  %v3093_v14 = vld [vmem:[%s5150_s1 + $0x68] sm:$0xff]  ;;  %v3098_v15 = vld [vmem:[%s5150_s1 + $0x60] sm:$0xff]  ;;  %v245_v16 = vadd.f32 %v244_v11, %v243_v5  ;;  %v135_v41 = vld [vmem:[%s5150_s1 + $0x10] sm:$0xff]  ;;  %v272_v44 = vsel %vm229_vm0, %v147_v40, 0.0 }
   0x5   :  { %v232_v17 = vadd.f32 %v231_v12, %v230_v13  ;;  %v270_v18 = vsel %vm229_vm0, %v3093_v14, 0.0  ;;  %v269_v19 = vsel %vm229_vm0, %v3098_v15, 0.0  ;;  %v3107_v20 = vld [vmem:[%s5150_s1 + $0xe8] sm:$0xff]  ;;  %v161_v21 = vld [vmem:[%s5150_s1 + $0xe0] sm:$0xff]  ;;  %v3125_v30 = vadd.f32 %v285_v26, %v284_v10  ;;  %v163_v47 = vld [vmem:[%s5150_s1 + $0xf0] sm:$0xff] }
   0x6   :  { %v271_v23 = vadd.f32 %v270_v18, %v269_v19  ;;  %v322_v24 = vsel %vm229_vm0, %v3107_v20, 0.0  ;;  %v321_v25 = vsel %vm229_vm0, %v161_v21, 0.0  ;;  %v158_v28 = vld [vmem:[%s5150_s1 + $0xc8] sm:$0xff]  ;;  %v157_v33 = vld [vmem:[%s5150_s1 + $0xc0] sm:$0xff]  ;;  %653 = vperm.xlu1 %2876, %v150_v2   ;;  %v3138_v36 = vadd.f32 %v246_v31, %v245_v16  ;;  %v159_v58 = vld [vmem:[%s5150_s1 + $0xd0] sm:$0xff] }
   0x7   :  { %v323_v29 = vadd.f32 %v322_v24, %v321_v25  ;;  %v309_v32 = vsel %vm229_vm0, %v158_v28, 0.0  ;;  %v174_v34 = vld [vmem:[%s5150_s1 + $0x148] sm:$0xff]  ;;  %v173_v35 = vld [vmem:[%s5150_s1 + $0x140] sm:$0xff]  ;;  %593 = vperm.xlu0 %2875, %v138_v7   ;;  %v308_v37 = vsel %vm229_vm0, %v157_v33, 0.0  ;;  %v233_v45 = vsel %vm229_vm0, %v135_v41, 0.0  ;;  %v175_v2 = vld [vmem:[%s5150_s1 + $0x150] sm:$0xff] }
   0x8   :  { %v361_v38 = vsel %vm229_vm0, %v174_v34, 0.0  ;;  %v360_v39 = vsel %vm229_vm0, %v173_v35, 0.0  ;;  %v310_v42 = vadd.f32 %v309_v32, %v308_v37  ;;  %v169_v46 = vld [vmem:[%s5150_s1 + $0x120] sm:$0xff]  ;;  %v3157_v48 = vadd.f32 %v272_v44, %v271_v23  ;;  %v170_v53 = vld [vmem:[%s5150_s1 + $0x128] sm:$0xff] }
   0x9   :  { %v362_v43 = vadd.f32 %v361_v38, %v360_v39  ;;  %v3159_v49 = vadd.f32 %v233_v45, %v232_v17  ;;  %v347_v50 = vsel %vm229_vm0, %v169_v46, 0.0  ;;  %v324_v51 = vsel %vm229_vm0, %v163_v47, 0.0  ;;  %v185_v52 = vld [vmem:[%s5150_s1 + $0x1a0] sm:$0xff]  ;;  %v186_v57 = vld [vmem:[%s5150_s1 + $0x1a8] sm:$0xff] }
   0xa   :  { %v3169_v54 = vadd.f32 %v324_v51, %v323_v29  ;;  %v399_v55 = vsel %vm229_vm0, %v185_v52, 0.0  ;;  %v348_v56 = vsel %vm229_vm0, %v170_v53, 0.0  ;;  %573 = vperm.xlu1 %2876, %v134_v8   ;;  %v400_v60 = vsel %vm229_vm0, %v186_v57, 0.0  ;;  %v181_v62 = vld [vmem:[%s5150_s1 + $0x180] sm:$0xff]  ;;  %v182_v6 = vld [vmem:[%s5150_s1 + $0x188] sm:$0xff] }
   0xb   :  { %568 = vperm.xlu0 %2875, %v133_v9   ;;  %v3179_v59 = vadd.f32 %v348_v56, %v347_v50  ;;  %v311_v61 = vsel %vm229_vm0, %v159_v58, 0.0  ;;  %v3186_v63 = vadd.f32 %v400_v60, %v399_v55  ;;  %v386_v1 = vsel %vm229_vm0, %v181_v62, 0.0  ;;  %v197_v3 = vld [vmem:[%s5150_s1 + $0x200] sm:$0xff]  ;;  %v198_v7 = vld [vmem:[%s5150_s1 + $0x208] sm:$0xff] }
   0xc   :  { %v3188_v0 = vadd.f32 %v311_v61, %v310_v42  ;;  %v363_v4 = vsel %vm229_vm0, %v175_v2, 0.0  ;;  %v438_v5 = vsel %vm229_vm0, %v197_v3, 0.0  ;;  %v387_v9 = vsel %vm229_vm0, %v182_v6, 0.0 }
   0xd   :  { %v3205_v8 = vadd.f32 %v363_v4, %v362_v43  ;;  %v439_v10 = vsel %vm229_vm0, %v198_v7, 0.0  ;;  %v3211_v11 = vadd.f32 %v387_v9, %v386_v1 }
   0xe   :  { %633 = vperm.xlu1 %2876, %v3093_v14   ;;  %v3213_v12 = vadd.f32 %v439_v10, %v438_v5 }
   0xf   :  { %628 = vperm.xlu0 %2875, %v3098_v15  }
  0x12   :  { %713 = vperm.xlu1 %2876, %v3107_v20  }
  0x13   :  { %708 = vperm.xlu0 %2875, %v161_v21  }
  0x16   :  { %658 = vperm.xlu1 %2876, %v151_v22  }
  0x17   :  { %598 = vperm.xlu0 %2875, %v139_v27  }
  0x1a   :  { %693 = vperm.xlu1 %2876, %v158_v28  }
  0x1b   :  { %688 = vperm.xlu0 %2875, %v157_v33  }
  0x1c   :  { %18 = vsyncpa [#allocation5], 0  ;;  %v140_v13 = vld [vmem:[%s5150_s1 + $0x38] sm:$0xff]  ;;  %v187_v18 = vld [vmem:[%s5150_s1 + $0x1b0] sm:$0xff]  ;;  %vm1534_vm1 = vcmask 1041409   ;;  %vm1536_vm2 = vcmask 1042434  }
  0x1d   :  { %v152_v14 = vld [vmem:[%s5150_s1 + $0x98] sm:$0xff]  ;;  %v171_v19 = vld [vmem:[%s5150_s1 + $0x130] sm:$0xff]  ;;  %v194_v20 = vld [vmem:[%s5150_s1 + $0x1e8] sm:$0xff]  ;;  %v248_v26 = vsel %vm229_vm0, %v140_v13, 0.0  ;;  %v402_v50 = vsel %vm229_vm0, %v187_v18, 0.0  ;;  %vm1538_vm3 = vcmask 1043459  }
  0x1e   :  { %773 = vperm.xlu1 %2876, %v174_v34   ;;  %v136_v15 = vld [vmem:[%s5150_s1 + $0x18] sm:$0xff]  ;;  %v193_v21 = vld [vmem:[%s5150_s1 + $0x1e0] sm:$0xff]  ;;  %v210_v22 = vld [vmem:[%s5150_s1 + $0x268] sm:$0xff]  ;;  %v287_v27 = vsel %vm229_vm0, %v152_v14, 0.0  ;;  %v249_v32 = vadd.f32 %v248_v26, %v3138_v36  ;;  %v350_v51 = vsel %vm229_vm0, %v171_v19, 0.0  ;;  %v403_v61 = vadd.f32 %v402_v50, %v3186_v63 }
  0x1f   :  { %768 = vperm.xlu0 %2875, %v173_v35   ;;  %v164_v16 = vld [vmem:[%s5150_s1 + $0xf8] sm:$0xff]  ;;  %v209_v23 = vld [vmem:[%s5150_s1 + $0x260] sm:$0xff]  ;;  %v199_v28 = vld [vmem:[%s5150_s1 + $0x210] sm:$0xff]  ;;  %v235_v31 = vsel %vm229_vm0, %v136_v15, 0.0  ;;  %v288_v33 = vadd.f32 %v287_v27, %v3125_v30  ;;  %v478_v1 = vsel %vm229_vm0, %v210_v22, 0.0  ;;  %v425_v4 = vsel %vm229_vm0, %v193_v21, 0.0 }
  0x20   :  { %v148_v17 = vld [vmem:[%s5150_s1 + $0x78] sm:$0xff]  ;;  %v183_v29 = vld [vmem:[%s5150_s1 + $0x190] sm:$0xff]  ;;  %v236_v34 = vadd.f32 %v235_v31, %v3159_v49  ;;  %v206_v35 = vld [vmem:[%s5150_s1 + $0x248] sm:$0xff]  ;;  %v250_v38 = vrot.slane %v249_v32, 4  ;;  %vm1540_vm4 = vcmask 1044484   ;;  %vm1542_vm5 = vcmask 1045509  }
  0x21   :  { %v176_v24 = vld [vmem:[%s5150_s1 + $0x158] sm:$0xff]  ;;  %v205_v37 = vld [vmem:[%s5150_s1 + $0x240] sm:$0xff]  ;;  %v289_v39 = vrot.slane %v288_v33, 4  ;;  %v274_v36 = vsel %vm229_vm0, %v148_v17, 0.0  ;;  %v211_v63 = vld [vmem:[%s5150_s1 + $0x270] sm:$0xff]  ;;  %vm1544_vm6 = vcmask 1046534  }
  0x22   :  { %638 = vperm.xlu1 %2876, %v147_v40   ;;  %v160_v25 = vld [vmem:[%s5150_s1 + $0xd8] sm:$0xff]  ;;  %v326_v40 = vsel %vm229_vm0, %v164_v16, 0.0  ;;  %v237_v30 = vrot.slane %v236_v34, 4  ;;  %v221_v42 = vld [vmem:[%s5150_s1 + $0x2c0] sm:$0xff]  ;;  %v275_v44 = vadd.f32 %v274_v36, %v3157_v48  ;;  %v365_v45 = vsel %vm229_vm0, %v176_v24, 0.0  ;;  %v218_v26 = vld [vmem:[%s5150_s1 + $0x2a8] sm:$0xff] }
  0x23   :  { %578 = vperm.xlu0 %2875, %v135_v41   ;;  %v222_v41 = vld [vmem:[%s5150_s1 + $0x2c8] sm:$0xff]  ;;  %v327_v43 = vadd.f32 %v326_v40, %v3169_v54  ;;  %v3287_v49 = vadd.f32 %v289_v39, %v288_v33  ;;  %v188_v48 = vld [vmem:[%s5150_s1 + $0x1b8] sm:$0xff]  ;;  %v217_v27 = vld [vmem:[%s5150_s1 + $0x2a0] sm:$0xff]  ;;  %vm1546_vm7 = vcmask 1047559   ;;  %vm3002_vm8 = vmmov 0  }
  0x24   :  { %v172_v54 = vld [vmem:[%s5150_s1 + $0x138] sm:$0xff]  ;;  %v3299_v55 = vadd.f32 %v237_v30, %v236_v34  ;;  %v223_v30 = vld [vmem:[%s5150_s1 + $0x2d0] sm:$0xff] }
  0x25   :  { %v328_v56 = vrot.slane %v327_v43, 4  ;;  %v291_v60 = vrot.slane %v3287_v49, 2  ;;  %v184_v36 = vld [vmem:[%s5150_s1 + $0x198] sm:$0xff] }
  0x26   :  { %748 = vperm.xlu1 %2876, %v169_v46   ;;  %v313_v46 = vsel %vm229_vm0, %v160_v25, 0.0  ;;  %v1584_v50 = vld [vmem:[%s5151_s2 + $0x18] sm:$0xff] }
  0x27   :  { %718 = vperm.xlu0 %2875, %v163_v47   ;;  %v3285_v47 = vadd.f32 %v250_v38, %v249_v32  ;;  %v3318_v9 = vadd.f32 %v328_v56, %v327_v43  ;;  %v504_v43 = vsel %vm229_vm0, %v218_v26, 0.0  ;;  %v1585_v56 = vld [vmem:[%s5151_s2 + $0x20] sm:$0xff] }
  0x2a   :  { %828 = vperm.xlu1 %2876, %v185_v52   ;;  %v366_v52 = vadd.f32 %v365_v45, %v3205_v8  ;;  %v239_v8 = vrot.slane %v3299_v55, 2  ;;  %v1582_v45 = vld [vmem:[%s5151_s2 + $0x8] sm:$0xff] }
  0x2b   :  { %753 = vperm.xlu0 %2875, %v170_v53   ;;  %v314_v53 = vadd.f32 %v313_v46, %v3188_v0  ;;  %v351_v0 = vadd.f32 %v350_v51, %v3179_v59  ;;  %v195_v59 = vld [vmem:[%s5150_s1 + $0x1f0] sm:$0xff]  ;;  %v1586_v46 = vld [vmem:[%s5151_s2 + $0x28] sm:$0xff]  ;;  %v391_v51 = vsel %vm229_vm0, %v184_v36, 0.0 }
  0x2c   :  { %v367_v5 = vrot.slane %v366_v52, 4  ;;  %v428_v40 = vsel %vm229_vm0, %v195_v59, 0.0 }
  0x2e   :  { %603 = vperm.xlu1 %2876, %v140_v13   ;;  %v441_v13 = vsel %vm229_vm0, %v199_v28, 0.0 }
  0x2f   :  { %833 = vperm.xlu0 %2875, %v186_v57   ;;  %v276_v57 = vrot.slane %v275_v44, 4 }
  0x31   :  { %v3320_v10 = vadd.f32 %v276_v57, %v275_v44 }
  0x32   :  { %698 = vperm.xlu1 %2876, %v159_v58   ;;  %v252_v58 = vrot.slane %v3285_v47, 2 }
  0x33   :  { %663 = vperm.xlu0 %2875, %v152_v14   ;;  %v278_v31 = vrot.slane %v3320_v10, 2 }
  0x36   :  { %808 = vperm.xlu1 %2876, %v181_v62   ;;  %v426_v62 = vsel %vm229_vm0, %v194_v20, 0.0 }
  0x37   :  { %778 = vperm.xlu0 %2875, %v175_v2   ;;  %v477_v2 = vsel %vm229_vm0, %v209_v23, 0.0  ;;  %v427_v32 = vadd.f32 %v426_v62, %v425_v4  ;;  %v212_v4 = vld [vmem:[%s5150_s1 + $0x278] sm:$0xff] }
  0x38   :  { %v479_v14 = vadd.f32 %v478_v1, %v477_v2  ;;  %v1587_v1 = vld [vmem:[%s5151_s2 + $0x30] sm:$0xff] }
  0x3a   :  { %888 = vperm.xlu1 %2876, %v197_v3   ;;  %v404_v3 = vsel %vm229_vm0, %v188_v48, 0.0 }
  0x3b   :  { %813 = vperm.xlu0 %2875, %v182_v6   ;;  %v315_v6 = vrot.slane %v314_v53, 4 }
  0x3e   :  { %583 = vperm.xlu1 %2876, %v136_v15   ;;  %v389_v15 = vsel %vm229_vm0, %v183_v29, 0.0 }
  0x3f   :  { %893 = vperm.xlu0 %2875, %v198_v7   ;;  %v352_v7 = vsel %vm229_vm0, %v172_v54, 0.0  ;;  %v390_v33 = vadd.f32 %v389_v15, %v3211_v11  ;;  %v253_v11 = vadd.f32 %v252_v58, %v3285_v47  ;;  %v503_v47 = vsel %vm229_vm0, %v217_v27, 0.0 }
  0x40   :  { %v429_v58 = vadd.f32 %v428_v40, %v427_v32 }
  0x42   :  { %723 = vperm.xlu1 %2876, %v164_v16   ;;  %v465_v16 = vsel %vm229_vm0, %v206_v35, 0.0 }
  0x43   :  { %643 = vperm.xlu0 %2875, %v148_v17   ;;  %v405_v17 = vadd.f32 %v404_v3, %v403_v61  ;;  %v207_v3 = vld [vmem:[%s5150_s1 + $0x250] sm:$0xff] }
  0x46   :  { %838 = vperm.xlu1 %2876, %v187_v18   ;;  %v464_v18 = vsel %vm229_vm0, %v205_v37, 0.0 }
  0x47   :  { %758 = vperm.xlu0 %2875, %v171_v19   ;;  %v517_v19 = vsel %vm229_vm0, %v222_v41, 0.0  ;;  %v3347_v34 = vadd.f32 %v465_v16, %v464_v18  ;;  %v1590_v16 = vld [vmem:[%s5151_s2 + $0x48] sm:$0xff]  ;;  %v482_v18 = vsel %vm229_vm0, %v212_v4, 0.0 }
  0x4a   :  { %873 = vperm.xlu1 %2876, %v194_v20   ;;  %v516_v20 = vsel %vm229_vm0, %v221_v42, 0.0 }
  0x4b   :  { %868 = vperm.xlu0 %2875, %v193_v21   ;;  %v353_v21 = vadd.f32 %v352_v7, %v351_v0  ;;  %v1583_v0 = vld [vmem:[%s5151_s2 + $0x10] sm:$0xff]  ;;  %v292_v7 = vadd.f32 %v291_v60, %v3287_v49  ;;  %v1592_v49 = vld [vmem:[%s5151_s2 + $0x58] sm:$0xff]  ;;  %v467_v60 = vsel %vm229_vm0, %v207_v3, 0.0 }
  0x4d   :  { %v354_v38 = vrot.slane %v353_v21, 4 }
  0x4e   :  { %953 = vperm.xlu1 %2876, %v210_v22   ;;  %v3328_v22 = vadd.f32 %v367_v5, %v366_v52  ;;  %v519_v52 = vsel %vm229_vm0, %v223_v30, 0.0  ;;  %v196_v5 = vld [vmem:[%s5150_s1 + $0x1f8] sm:$0xff] }
  0x4f   :  { %948 = vperm.xlu0 %2875, %v209_v23   ;;  %v3330_v23 = vadd.f32 %v315_v6, %v314_v53  ;;  %v2580_v53 = vpack.c.bf16 %v1586_v46, %v1582_v45  ;;  %v3391_v2 = vadd.f32 %v354_v38, %v353_v21  ;;  %v254_v6 = vrot.slane %v253_v11, 1  ;;  %v1596_v21 = vld [vmem:[%s5151_s2 + $0x78] sm:$0xff]  ;;  %v1602_v46 = vld [vmem:[%s5151_s2 + $0xa8] sm:$0xff] }
  0x50   :  { %v293_v38 = vrot.slane %v292_v7, 1  ;;  %v468_v45 = vadd.f32 %v467_v60, %v3347_v34  ;;  %v1605_v60 = vld [vmem:[%s5151_s2 + $0xc0] sm:$0xff] }
  0x51   :  { %2581 = vmatprep.subr.bf16.mxu0 %v2580_v53  ;;  %v1597_v53 = vld [vmem:[%s5151_s2 + $0x80] sm:$0xff] }
  0x52   :  { %783 = vperm.xlu1 %2876, %v176_v24   ;;  %v442_v24 = vadd.f32 %v441_v13, %v3213_v12 }
  0x53   :  { %703 = vperm.xlu0 %2875, %v160_v25   ;;  %v480_v25 = vsel %vm229_vm0, %v211_v63, 0.0 }
  0x54   :  { %v3349_v39 = vadd.f32 %v480_v25, %v479_v14  ;;  %v3407_v14 = vadd.f32 %v391_v51, %v390_v33  ;;  %v1593_v25 = vld [vmem:[%s5151_s2 + $0x60] sm:$0xff]  ;;  %v1595_v33 = vld [vmem:[%s5151_s2 + $0x70] sm:$0xff] }
  0x56   :  { %898 = vperm.xlu1 %2876, %v199_v28   ;;  %v200_v28 = vld [vmem:[%s5150_s1 + $0x218] sm:$0xff] }
  0x57   :  { %818 = vperm.xlu0 %2875, %v183_v29   ;;  %v330_v29 = vrot.slane %v3318_v9, 2  ;;  %v443_v12 = vsel %vm229_vm0, %v200_v28, 0.0 }
  0x58   :  { %v444_v44 = vadd.f32 %v443_v12, %v442_v24  ;;  %v1589_v24 = vld [vmem:[%s5151_s2 + $0x40] sm:$0xff]  ;;  %v1591_v12 = vld [vmem:[%s5151_s2 + $0x50] sm:$0xff] }
  0x59   :  { %v2586_v32 = vpack.c.bf16 %v1593_v25, %v1589_v24  ;;  %v2682_v40 = vpack.c.bf16 %v1595_v33, %v1591_v12  ;;  %v1607_v25 = vld [vmem:[%s5151_s2 + $0xd0] sm:$0xff] }
  0x5a   :  { %933 = vperm.xlu1 %2876, %v206_v35   ;;  %v518_v35 = vadd.f32 %v517_v19, %v516_v20  ;;  %v445_v13 = vrot.slane %v444_v44, 4  ;;  %v430_v19 = vsel %vm229_vm0, %v196_v5, 0.0 }
  0x5b   :  { %928 = vperm.xlu0 %2875, %v205_v37   ;;  %v406_v37 = vrot.slane %v405_v17, 4 }
  0x5c   :  { %v3409_v15 = vadd.f32 %v519_v52, %v518_v35  ;;  %v356_v35 = vrot.slane %v3391_v2, 2  ;;  %v1604_v52 = vld [vmem:[%s5151_s2 + $0xb8] sm:$0xff] }
  0x5d   :  { %v3383_v57 = vadd.f32 %v406_v37, %v405_v17  ;;  %v1594_v17 = vld [vmem:[%s5151_s2 + $0x68] sm:$0xff]  ;;  %v255_v37 = vadd.f32 %v254_v6, %v253_v11 }
  0x5e   :  { %1013 = vperm.xlu1 %2876, %v222_v41   ;;  %v369_v41 = vrot.slane %v3328_v22, 2  ;;  %v2584_v20 = vpack.c.bf16 %v1594_v17, %v1590_v16  ;;  %v1598_v11 = vld [vmem:[%s5151_s2 + $0x88] sm:$0xff] }
  0x5f   :  { %1008 = vperm.xlu0 %2875, %v221_v42   ;;  %v317_v42 = vrot.slane %v3330_v23, 2  ;;  %v2588_v51 = vpack.c.bf16 %v1602_v46, %v1598_v11  ;;  %v1620_v46 = vld [vmem:[%s5151_s2 + $0x138] sm:$0xff] }
  0x62   :  { %843 = vperm.xlu1 %2876, %v188_v48   ;;  %v1588_v48 = vld [vmem:[%s5151_s2 + $0x38] sm:$0xff] }
  0x63   :  { %763 = vperm.xlu0 %2875, %v172_v54   ;;  %v1581_v54 = vld [vmem:[%s5151_s2] sm:$0xff]  ;;  %v2676_v61 = vpack.c.bf16 %v1588_v48, %v1584_v50  ;;  %v3467_v50 = vadd.f32 %v482_v18, %v3349_v39 }
  0x64   :  { %v2582_v62 = vpack.c.bf16 %v1585_v56, %v1581_v54  ;;  %v1601_v39 = vld [vmem:[%s5151_s2 + $0xa0] sm:$0xff]  ;;  %v279_v54 = vadd.f32 %v278_v31, %v3320_v10  ;;  %v331_v10 = vadd.f32 %v330_v29, %v3318_v9  ;;  %v3502_v31 = vld [vmem:[%s5150_s1 + $0x2b8] sm:$0xff]  ;;  %v1606_v9 = vld [vmem:[%s5151_s2 + $0xc8] sm:$0xff] }
  0x65   :  { %2677 = vmatprep.subr.bf16.mxu1 %v2676_v61  ;;  %v1599_v61 = vld [vmem:[%s5151_s2 + $0x90] sm:$0xff]  ;;  %v1610_v29 = vld [vmem:[%s5151_s2 + $0xe8] sm:$0xff]  ;;  %v1609_v18 = vld [vmem:[%s5151_s2 + $0xe0] sm:$0xff] }
  0x66   :  { %958 = vperm.xlu1 %2876, %v211_v63   ;;  %v2678_v63 = vpack.c.bf16 %v1587_v1, %v1583_v0  ;;  %2583 = vmatpush1.bf16.msra.mxu0 %v2582_v62  ;;  %v1603_v62 = vld [vmem:[%s5151_s2 + $0xb0] sm:$0xff]  ;;  %v543_v0 = vmax.f32 %v255_v37, 1.0  ;;  %v294_v1 = vadd.f32 %v293_v38, %v292_v7  ;;  %v2592_v17 = vpack.c.bf16 %v1610_v29, %v1606_v9  ;;  %v1625_v9 = vld [vmem:[%s5151_s2 + $0x160] sm:$0xff] }
  0x67   :  { %878 = vperm.xlu0 %2875, %v195_v59   ;;  %v3405_v59 = vadd.f32 %v504_v43, %v503_v47  ;;  %v393_v43 = vrot.slane %v3407_v14, 4  ;;  %2585 = vmatprep.subr.bf16.mxu0 %v2584_v20  ;;  %v2686_v6 = vpack.c.bf16 %v1603_v62, %v1599_v61  ;;  %v280_v20 = vrot.slane %v279_v54, 1 }
  0x68   :  { %2679 = vmatpush1.bf16.msra.mxu1 %v2678_v63  ;;  %v2594_v24 = vpack.c.bf16 %v1609_v18, %v1605_v60  ;;  %v332_v12 = vrot.slane %v331_v10, 1  ;;  %v484_v37 = vrot.slane %v3467_v50, 4 }
  0x6a   :  { %993 = vperm.xlu1 %2876, %v218_v26   ;;  %v408_v26 = vrot.slane %v3383_v57, 2  ;;  %2587 = vmatpush1.bf16.msra.mxu0 %v2586_v32  ;;  %v546_v32 = vmax.f32 %v294_v1, 1.0  ;;  %v1626_v1 = vld [vmem:[%s5151_s2 + $0x168] sm:$0xff] }
  0x6b   :  { %988 = vperm.xlu0 %2875, %v217_v27   ;;  %v3436_v27 = vadd.f32 %v239_v8, %v3299_v55  ;;  %v219_v55 = vld [vmem:[%s5150_s1 + $0x2b0] sm:$0xff]  ;;  %v3451_v8 = vld [vmem:[%s5150_s1 + $0x258] sm:$0xff]  ;;  %2589 = vmatprep.subr.bf16.mxu0 %v2588_v51  ;;  %v3570_v51 = vadd.f32 %v280_v20, %v279_v54  ;;  %v357_v54 = vadd.f32 %v356_v35, %v3391_v2 }
  0x6c   :  { %v506_v34 = vsel %vm229_vm0, %v219_v55, 0.0  ;;  %v469_v47 = vsel %vm229_vm0, %v3451_v8, 0.0  ;;  %v1624_v2 = vld [vmem:[%s5151_s2 + $0x158] sm:$0xff] }
  0x6d   :  { %v241_v48 = vrot.slane %v3436_v27, 1  ;;  %v507_v63 = vadd.f32 %v506_v34, %v3405_v59  ;;  %v470_v16 = vadd.f32 %v469_v47, %v468_v45  ;;  %v508_v59 = vsel %vm229_vm0, %v3502_v31, 0.0  ;;  %v1618_v45 = vld [vmem:[%s5151_s2 + $0x128] sm:$0xff]  ;;  %v1617_v34 = vld [vmem:[%s5151_s2 + $0x120] sm:$0xff] }
  0x6e   :  { %903 = vperm.xlu1 %2876, %v200_v28   ;;  %v2680_v28 = vpack.c.bf16 %v1596_v21, %v1592_v49  ;;  %v1612_v49 = vld [vmem:[%s5151_s2 + $0xf8] sm:$0xff]  ;;  %v358_v18 = vrot.slane %v357_v54, 1 }
  0x6f   :  { %823 = vperm.xlu0 %2875, %v184_v36   ;;  %v3453_v36 = vadd.f32 %v445_v13, %v444_v44  ;;  %v1600_v44 = vld [vmem:[%s5151_s2 + $0x98] sm:$0xff] }
  0x70   :  { %2681 = vmatprep.subr.bf16.mxu1 %v2680_v28  ;;  %v2684_v56 = vpack.c.bf16 %v1604_v52, %v1600_v44  ;;  %v1608_v13 = vld [vmem:[%s5151_s2 + $0xd8] sm:$0xff]  ;;  %v1611_v28 = vld [vmem:[%s5151_s2 + $0xf0] sm:$0xff]  ;;  %v1613_v44 = vld [vmem:[%s5151_s2 + $0x100] sm:$0xff] }
  0x71   :  { %2683 = vmatpush1.bf16.msra.mxu1 %v2682_v40  ;;  %v2688_v21 = vpack.c.bf16 %v1612_v49, %v1608_v13  ;;  %v2690_v33 = vpack.c.bf16 %v1611_v28, %v1607_v25  ;;  %v1615_v52 = vld [vmem:[%s5151_s2 + $0x110] sm:$0xff]  ;;  %v1632_v25 = vld [vmem:[%s5151_s2 + $0x198] sm:$0xff] }
  0x72   :  { %1018 = vperm.xlu1 %2876, %v223_v30   ;;  %v431_v30 = vadd.f32 %v430_v19, %v429_v58  ;;  %v2590_v58 = vpack.c.bf16 %v1601_v39, %v1597_v53  ;;  %2685 = vmatprep.subr.bf16.mxu1 %v2684_v56  ;;  %v3532_v19 = vadd.f32 %v241_v48, %v3436_v27  ;;  %v1619_v53 = vld [vmem:[%s5151_s2 + $0x130] sm:$0xff] }
  0x73   :  { %938 = vperm.xlu0 %2875, %v207_v3   ;;  %v3494_v3 = vld [vmem:[%s5150_s1 + $0x2d8] sm:$0xff]  ;;  %v318_v27 = vadd.f32 %v317_v42, %v3330_v23  ;;  %v333_v39 = vadd.f32 %v332_v12, %v331_v10  ;;  %v2694_v56 = vpack.c.bf16 %v1619_v53, %v1615_v52  ;;  %v409_v10 = vadd.f32 %v408_v26, %v3383_v57 }
  0x74   :  { %v432_v7 = vrot.slane %v431_v30, 4  ;;  %2591 = vmatpush1.bf16.msra.mxu0 %v2590_v58  ;;  %v1616_v23 = vld [vmem:[%s5151_s2 + $0x118] sm:$0xff]  ;;  %v542_v47 = vmax.f32 %v3532_v19, 1.0  ;;  %v3583_v58 = vadd.f32 %v484_v37, %v3467_v50  ;;  %v545_v57 = vmax.f32 %v3570_v51, 1.0  ;;  %v1629_v37 = vld [vmem:[%s5151_s2 + $0x180] sm:$0xff]  ;;  %v1638_v51 = vld [vmem:[%s5151_s2 + $0x1c8] sm:$0xff] }
  0x75   :  { %2687 = vmatpush1.bf16.msra.mxu1 %v2686_v6  ;;  %2593 = vmatprep.subr.bf16.mxu0 %v2592_v17  ;;  %v319_v48 = vrot.slane %v318_v27, 1  ;;  %v1627_v17 = vld [vmem:[%s5151_s2 + $0x170] sm:$0xff]  ;;  %v549_v49 = vmax.f32 %v333_v39, 1.0 }
  0x76   :  { %963 = vperm.xlu1 %2876, %v212_v4   ;;  %v447_v4 = vrot.slane %v3453_v36, 2  ;;  %v3544_v38 = vadd.f32 %v432_v7, %v431_v30  ;;  %2689 = vmatprep.subr.bf16.mxu1 %v2688_v21  ;;  %v471_v30 = vrot.slane %v470_v16, 4  ;;  %v1628_v7 = vld [vmem:[%s5151_s2 + $0x178] sm:$0xff]  ;;  %v486_v20 = vrot.slane %v3583_v58, 2 }
  0x77   :  { %883 = vperm.xlu0 %2875, %v196_v5   ;;  %v3506_v5 = vadd.f32 %v393_v43, %v3407_v14  ;;  %v521_v14 = vsel %vm229_vm0, %v3494_v3, 0.0  ;;  %v509_v43 = vadd.f32 %v508_v59, %v507_v63  ;;  %v1621_v63 = vld [vmem:[%s5151_s2 + $0x140] sm:$0xff]  ;;  %v1623_v59 = vld [vmem:[%s5151_s2 + $0x150] sm:$0xff]  ;;  %v320_v60 = vadd.f32 %v319_v48, %v318_v27  ;;  %v1644_v48 = vld [vmem:[%s5151_s2 + $0x1f8] sm:$0xff] }
  0x78   :  { %v522_v40 = vadd.f32 %v521_v14, %v3409_v15  ;;  %v370_v15 = vadd.f32 %v369_v41, %v3328_v22  ;;  %2595 = vmatpush1.bf16.msra.mxu0 %v2594_v24  ;;  %v2692_v22 = vpack.c.bf16 %v1620_v46, %v1616_v23  ;;  %v2598_v41 = vpack.c.bf16 %v1617_v34, %v1613_v44  ;;  %v1630_v24 = vld [vmem:[%s5151_s2 + $0x188] sm:$0xff] }
  0x79   :  { %v395_v42 = vrot.slane %v3506_v5, 2  ;;  %2691 = vmatpush1.bf16.msra.mxu1 %v2690_v33  ;;  %v434_v61 = vrot.slane %v3544_v38, 2  ;;  %v3595_v35 = vadd.f32 %v471_v30, %v470_v16  ;;  %v2696_v16 = vpack.c.bf16 %v1628_v7, %v1624_v2  ;;  %v1636_v33 = vld [vmem:[%s5151_s2 + $0x1b8] sm:$0xff]  ;;  %v1635_v30 = vld [vmem:[%s5151_s2 + $0x1b0] sm:$0xff] }
  0x7a   :  { %1365 = vperm.xlu1 %2876, %v543_v0   ;;  %v523_v62 = vrot.slane %v522_v40, 4  ;;  %v510_v0 = vrot.slane %v509_v43, 4  ;;  %2693 = vmatprep.subr.bf16.mxu1 %v2692_v22  ;;  %v371_v50 = vrot.slane %v370_v15, 1  ;;  %v2602_v14 = vpack.c.bf16 %v1625_v9, %v1621_v63  ;;  %v1642_v22 = vld [vmem:[%s5151_s2 + $0x1e8] sm:$0xff] }
  0x7b   :  { %998 = vperm.xlu0 %2875, %v219_v55   ;;  %v1614_v55 = vld [vmem:[%s5151_s2 + $0x108] sm:$0xff]  ;;  %v396_v26 = vadd.f32 %v395_v42, %v3506_v5  ;;  %v2698_v19 = vpack.c.bf16 %v1627_v17, %v1623_v59  ;;  %v448_v12 = vadd.f32 %v447_v4, %v3453_v36  ;;  %v1631_v42 = vld [vmem:[%s5151_s2 + $0x190] sm:$0xff]  ;;  %v435_v46 = vadd.f32 %v434_v61, %v3544_v38  ;;  %v1652_v59 = vld [vmem:[%s5151_s2 + $0x238] sm:$0xff] }
  0x7c   :  { %v2596_v11 = vpack.c.bf16 %v1618_v45, %v1614_v55  ;;  %v3623_v5 = vadd.f32 %v523_v62, %v522_v40  ;;  %v3625_v21 = vadd.f32 %v510_v0, %v509_v43  ;;  %v3636_v28 = vadd.f32 %v371_v50, %v370_v15  ;;  %v1633_v40 = vld [vmem:[%s5151_s2 + $0x1a0] sm:$0xff]  ;;  %v1639_v50 = vld [vmem:[%s5151_s2 + $0x1d0] sm:$0xff] }
  0x7d   :  { %2695 = vmatpush1.bf16.msra.mxu1 %v2694_v56  ;;  %v473_v43 = vrot.slane %v3595_v35, 2  ;;  %v397_v4 = vrot.slane %v396_v26, 1  ;;  %v2700_v45 = vpack.c.bf16 %v1636_v33, %v1632_v25  ;;  %v2606_v23 = vpack.c.bf16 %v1633_v40, %v1629_v37  ;;  %v1641_v56 = vld [vmem:[%s5151_s2 + $0x1e0] sm:$0xff]  ;;  %v1651_v25 = vld [vmem:[%s5151_s2 + $0x230] sm:$0xff]  ;;  %v1654_v33 = vld [vmem:[%s5151_s2 + $0x248] sm:$0xff] }
  0x7e   :  { %943 = vperm.xlu1 %2876, %v3451_v8   ;;  %2597 = vmatprep.subr.bf16.mxu0 %v2596_v11  ;;  %v1622_v8 = vld [vmem:[%s5151_s2 + $0x148] sm:$0xff]  ;;  %v548_v15 = vmax.f32 %v320_v60, 1.0  ;;  %v359_v11 = vadd.f32 %v358_v18, %v357_v54  ;;  %v2702_v44 = vpack.c.bf16 %v1635_v30, %v1631_v42  ;;  %v525_v34 = vrot.slane %v3623_v5, 2  ;;  %v1637_v54 = vld [vmem:[%s5151_s2 + $0x1c0] sm:$0xff]  ;;  %v1656_v40 = vld [vmem:[%s5151_s2 + $0x258] sm:$0xff] }
  0x7f   :  { %1380 = vperm.xlu0 %2875, %v546_v32   ;;  %2599 = vmatpush1.bf16.msra.mxu0 %v2598_v41  ;;  %v2600_v6 = vpack.c.bf16 %v1626_v1, %v1622_v8  ;;  %v410_v32 = vrot.slane %v409_v10, 1  ;;  %v1640_v41 = vld [vmem:[%s5151_s2 + $0x1d8] sm:$0xff]  ;;  %v552_v38 = vmax.f32 %v3636_v28, 1.0  ;;  %v449_v53 = vrot.slane %v448_v12, 1  ;;  %v1645_v17 = vld [vmem:[%s5151_s2 + $0x200] sm:$0xff]  ;;  %v1658_v37 = vld [vmem:[%s5151_s2 + $0x268] sm:$0xff] }
  0x80   :  { %2697 = vmatprep.subr.bf16.mxu1 %v2696_v16  ;;  %v2608_v39 = vpack.c.bf16 %v1642_v22, %v1638_v51  ;;  %v398_v0 = vadd.f32 %v397_v4, %v396_v26  ;;  %v487_v8 = vadd.f32 %v486_v20, %v3583_v58  ;;  %v2704_v1 = vpack.c.bf16 %v1644_v48, %v1640_v41  ;;  %v1646_v58 = vld [vmem:[%s5151_s2 + $0x208] sm:$0xff]  ;;  %v1660_v4 = vld [vmem:[%s5151_s2 + $0x278] sm:$0xff] }
  0x81   :  { %v3609_v29 = vpop.permute.xlu1 %648  ;;  %2601 = vmatprep.subr.bf16.mxu0 %v2600_v6  ;;  %2699 = vmatpush1.bf16.msra.mxu1 %v2698_v19  ;;  %v3674_v52 = vadd.f32 %v410_v32, %v409_v10  ;;  %v2610_v2 = vpack.c.bf16 %v1641_v56, %v1637_v54  ;;  %v1643_v10 = vld [vmem:[%s5151_s2 + $0x1f0] sm:$0xff]  ;;  %v551_v6 = vmax.f32 %v359_v11, 1.0  ;;  %v436_v7 = vrot.slane %v435_v46, 1  ;;  %v1668_v54 = vld [vmem:[%s5151_s2 + $0x2b8] sm:$0xff]  ;;  %v1661_v56 = vld [vmem:[%s5151_s2 + $0x280] sm:$0xff] }
  0x82   :  { %v3611_v13 = vpop.permute.xlu0 %588  ;;  %1360 = vperm.xlu1 %2876, %v542_v47   ;;  %v512_v47 = vrot.slane %v3625_v21, 2  ;;  %2701 = vmatprep.subr.bf16.mxu1 %v2700_v45  ;;  %v474_v63 = vadd.f32 %v473_v43, %v3595_v35  ;;  %v2706_v9 = vpack.c.bf16 %v1643_v10, %v1639_v50  ;;  %v3708_v16 = vadd.f32 %v449_v53, %v448_v12  ;;  %v1653_v45 = vld [vmem:[%s5151_s2 + $0x240] sm:$0xff]  ;;  %v1666_v53 = vld [vmem:[%s5151_s2 + $0x2a8] sm:$0xff] }
  0x83   :  { %1023 = vperm.xlu0 %2875, %v3494_v3   ;;  %v1634_v3 = vld [vmem:[%s5151_s2 + $0x1a8] sm:$0xff]  ;;  %2603 = vmatpush1.bf16.msra.mxu0 %v2602_v14  ;;  %v555_v26 = vmax.f32 %v3674_v52, 1.0  ;;  %v526_v35 = vadd.f32 %v525_v34, %v3623_v5  ;;  %v554_v19 = vmax.f32 %v398_v0, 1.0  ;;  %v488_v20 = vrot.slane %v487_v8, 1  ;;  %v1655_v34 = vld [vmem:[%s5151_s2 + $0x250] sm:$0xff]  ;;  %v1665_v0 = vld [vmem:[%s5151_s2 + $0x2a0] sm:$0xff] }
  0x84   :  { %v2604_v27 = vpack.c.bf16 %v1634_v3, %v1630_v24  ;;  %v1647_v3 = vld [vmem:[%s5151_s2 + $0x210] sm:$0xff]  ;;  %v437_v28 = vadd.f32 %v436_v7, %v435_v46  ;;  %v475_v32 = vrot.slane %v474_v63, 1  ;;  %v513_v12 = vadd.f32 %v512_v47, %v3625_v21  ;;  %v1662_v52 = vld [vmem:[%s5151_s2 + $0x288] sm:$0xff] }
  0x85   :  { %v3651_v55 = vpop.permute.xlu1 %653  ;;  %2703 = vmatpush1.bf16.msra.mxu1 %v2702_v44  ;;  %v558_v43 = vmax.f32 %v3708_v16, 1.0  ;;  %v2616_v21 = vpack.c.bf16 %v1658_v37, %v1654_v33  ;;  %v527_v11 = vrot.slane %v526_v35, 1  ;;  %v2712_v46 = vpack.c.bf16 %v1660_v4, %v1656_v40  ;;  %v1659_v47 = vld [vmem:[%s5151_s2 + $0x270] sm:$0xff]  ;;  %v1672_v16 = vld [vmem:[%s5151_s2 + $0x2d8] sm:$0xff] }
  0x86   :  { %v3653_v36 = vpop.permute.xlu0 %593  ;;  %1395 = vperm.xlu1 %2876, %v549_v49   ;;  %2605 = vmatprep.subr.bf16.mxu0 %v2604_v27  ;;  %v1649_v49 = vld [vmem:[%s5151_s2 + $0x220] sm:$0xff]  ;;  %v2710_v27 = vpack.c.bf16 %v1651_v25, %v1647_v3  ;;  %v557_v51 = vmax.f32 %v437_v28, 1.0  ;;  %v476_v22 = vadd.f32 %v475_v32, %v474_v63  ;;  %v514_v41 = vrot.slane %v513_v12, 1  ;;  %v1667_v7 = vld [vmem:[%s5151_s2 + $0x2b0] sm:$0xff]  ;;  %v1680_v33 = vld [vmem:[%s5151_s2 + $0x318] sm:$0xff] }
  0x87   :  { %1375 = vperm.xlu0 %2875, %v545_v57   ;;  %2607 = vmatpush1.bf16.msra.mxu0 %v2606_v23  ;;  %v1650_v57 = vld [vmem:[%s5151_s2 + $0x228] sm:$0xff]  ;;  %v2614_v24 = vpack.c.bf16 %v1649_v49, %v1645_v17  ;;  %v1657_v23 = vld [vmem:[%s5151_s2 + $0x260] sm:$0xff]  ;;  %v2620_v48 = vpack.c.bf16 %v1666_v53, %v1662_v52  ;;  %v2622_v10 = vpack.c.bf16 %v1665_v0, %v1661_v56  ;;  %v1675_v3 = vld [vmem:[%s5151_s2 + $0x2f0] sm:$0xff] }
  0x88   :  { %2609 = vmatprep.subr.bf16.mxu0 %v2608_v39  ;;  %2705 = vmatprep.subr.bf16.mxu1 %v2704_v1  ;;  %v2612_v14 = vpack.c.bf16 %v1650_v57, %v1646_v58  ;;  %v2618_v44 = vpack.c.bf16 %v1657_v23, %v1653_v45  ;;  %v1664_v39 = vld [vmem:[%s5151_s2 + $0x298] sm:$0xff]  ;;  %v515_v58 = vadd.f32 %v514_v41, %v513_v12  ;;  %v1673_v17 = vld [vmem:[%s5151_s2 + $0x2e0] sm:$0xff]  ;;  %v1678_v12 = vld [vmem:[%s5151_s2 + $0x308] sm:$0xff] }
  0x89   :  { %v3685_v61 = vpop.permute.xlu1 %573  ;;  %2707 = vmatpush1.bf16.msra.mxu1 %v2706_v9  ;;  %v2716_v50 = vpack.c.bf16 %v1668_v54, %v1664_v39  ;;  %v560_v9 = vmax.f32 %v476_v22, 1.0  ;;  %v1684_v40 = vld [vmem:[%s5151_s2 + $0x338] sm:$0xff]  ;;  %v1690_v22 = vld [vmem:[%s5151_s2 + $0x368] sm:$0xff]  ;;  %v1685_v53 = vld [vmem:[%s5151_s2 + $0x340] sm:$0xff] }
  0x8a   :  { %v3687_v62 = vpop.permute.xlu0 %568  ;;  %1390 = vperm.xlu1 %2876, %v548_v15   ;;  %v489_v15 = vadd.f32 %v488_v20, %v487_v8  ;;  %v563_v28 = vmax.f32 %v515_v58, 1.0  ;;  %v2724_v23 = vpack.c.bf16 %v1684_v40, %v1680_v33  ;;  %v1688_v41 = vld [vmem:[%s5151_s2 + $0x358] sm:$0xff]  ;;  %v1689_v39 = vld [vmem:[%s5151_s2 + $0x360] sm:$0xff] }
  0x8b   :  { %1003 = vperm.xlu0 %2875, %v3502_v31   ;;  %v1648_v31 = vld [vmem:[%s5151_s2 + $0x218] sm:$0xff]  ;;  %2611 = vmatpush1.bf16.msra.mxu0 %v2610_v2  ;;  %v528_v2 = vadd.f32 %v527_v11, %v526_v35  ;;  %v1679_v11 = vld [vmem:[%s5151_s2 + $0x310] sm:$0xff]  ;;  %v2634_v0 = vpack.c.bf16 %v1689_v39, %v1685_v53  ;;  %v1705_v40 = vld [vmem:[%s5151_s2 + $0x3e0] sm:$0xff] }
  0x8c   :  { %v2708_v5 = vpack.c.bf16 %v1652_v59, %v1648_v31  ;;  %2613 = vmatprep.subr.bf16.mxu0 %v2612_v14  ;;  %v561_v63 = vmax.f32 %v489_v15, 1.0  ;;  %v1670_v31 = vld [vmem:[%s5151_s2 + $0x2c8] sm:$0xff]  ;;  %v1676_v14 = vld [vmem:[%s5151_s2 + $0x2f8] sm:$0xff]  ;;  %v1669_v59 = vld [vmem:[%s5151_s2 + $0x2c0] sm:$0xff] }
  0x8d   :  { %v3720_v60 = vpop.permute.xlu1 %633  ;;  %v2720_v20 = vpack.c.bf16 %v1676_v14, %v1672_v16  ;;  %v564_v25 = vmax.f32 %v528_v2, 1.0  ;;  %v1692_v52 = vld [vmem:[%s5151_s2 + $0x378] sm:$0xff]  ;;  %v1687_v2 = vld [vmem:[%s5151_s2 + $0x350] sm:$0xff]  ;;  %v1697_v16 = vld [vmem:[%s5151_s2 + $0x3a0] sm:$0xff] }
  0x8e   :  { %v3722_v18 = vpop.permute.xlu0 %628  ;;  %1405 = vperm.xlu1 %2876, %v551_v6   ;;  %2709 = vmatprep.subr.bf16.mxu1 %v2708_v5  ;;  %v1663_v6 = vld [vmem:[%s5151_s2 + $0x290] sm:$0xff]  ;;  %v2626_v5 = vpack.c.bf16 %v1673_v17, %v1669_v59  ;;  %v2728_v56 = vpack.c.bf16 %v1692_v52, %v1688_v41  ;;  %v1696_v58 = vld [vmem:[%s5151_s2 + $0x398] sm:$0xff]  ;;  %v177_v39 = vld [vmem:[%s5150_s1 + $0x160] sm:$0xff] }
  0x8f   :  { %1410 = vperm.xlu0 %2875, %v552_v38   ;;  %2615 = vmatpush1.bf16.msra.mxu0 %v2614_v24  ;;  %v2714_v38 = vpack.c.bf16 %v1659_v47, %v1655_v34  ;;  %v2718_v57 = vpack.c.bf16 %v1667_v7, %v1663_v6  ;;  %v1671_v24 = vld [vmem:[%s5151_s2 + $0x2d0] sm:$0xff]  ;;  %v3852_v34 = vld [vmem:[%s5150_s1 + $0x48] sm:$0xff]  ;;  %v1708_v33 = vld [vmem:[%s5151_s2 + $0x3f8] sm:$0xff] }
  0x90   :  { %2711 = vmatpush1.bf16.msra.mxu1 %v2710_v27  ;;  %2617 = vmatprep.subr.bf16.mxu0 %v2616_v21  ;;  %v2722_v32 = vpack.c.bf16 %v1675_v3, %v1671_v24  ;;  %v1682_v27 = vld [vmem:[%s5151_s2 + $0x328] sm:$0xff]  ;;  %v1681_v21 = vld [vmem:[%s5151_s2 + $0x320] sm:$0xff]  ;;  %v257_v53 = vsel %vm229_vm0, %v3852_v34, 0.0 }
  0x91   :  { %v3750_v42 = vpop.permute.xlu1 %713  ;;  %2713 = vmatprep.subr.bf16.mxu1 %v2712_v46  ;;  %v2628_v37 = vpack.c.bf16 %v1682_v27, %v1678_v12  ;;  %v1683_v46 = vld [vmem:[%s5151_s2 + $0x330] sm:$0xff]  ;;  %v3892_v6 = vld [vmem:[%s5150_s1 + $0xa8] sm:$0xff]  ;;  %v165_v24 = vld [vmem:[%s5150_s1 + $0x100] sm:$0xff] }
  0x92   :  { %v3752_v30 = vpop.permute.xlu0 %708  ;;  %1420 = vperm.xlu1 %2876, %v554_v19   ;;  %v2726_v47 = vpack.c.bf16 %v1683_v46, %v1679_v11  ;;  %v166_v3 = vld [vmem:[%s5150_s1 + $0x108] sm:$0xff]  ;;  %v1704_v12 = vld [vmem:[%s5151_s2 + $0x3d8] sm:$0xff]  ;;  %v1703_v11 = vld [vmem:[%s5151_s2 + $0x3d0] sm:$0xff] }
  0x93   :  { %1425 = vperm.xlu0 %2875, %v555_v26   ;;  %2619 = vmatpush1.bf16.msra.mxu0 %v2618_v44  ;;  %v1674_v26 = vld [vmem:[%s5151_s2 + $0x2e8] sm:$0xff]  ;;  %v3847_v44 = vld [vmem:[%s5150_s1 + $0x40] sm:$0xff]  ;;  %v1707_v46 = vld [vmem:[%s5151_s2 + $0x3f0] sm:$0xff] }
  0x94   :  { %2715 = vmatpush1.bf16.msra.mxu1 %v2714_v38  ;;  %2621 = vmatprep.subr.bf16.mxu0 %v2620_v48  ;;  %v2624_v35 = vpack.c.bf16 %v1674_v26, %v1670_v31  ;;  %v1700_v31 = vld [vmem:[%s5151_s2 + $0x3b8] sm:$0xff]  ;;  %v1693_v26 = vld [vmem:[%s5151_s2 + $0x380] sm:$0xff]  ;;  %v256_v52 = vsel %vm229_vm0, %v3847_v44, 0.0 }
  0x95   :  { %v3778_v8 = vpop.permute.xlu1 %658  ;;  %2717 = vmatprep.subr.bf16.mxu1 %v2716_v50  ;;  %v1691_v50 = vld [vmem:[%s5151_s2 + $0x370] sm:$0xff]  ;;  %v2732_v59 = vpack.c.bf16 %v1700_v31, %v1696_v58  ;;  %v2638_v17 = vpack.c.bf16 %v1697_v16, %v1693_v26  ;;  %v334_v58 = vsel %vm229_vm0, %v165_v24, 0.0 }
  0x96   :  { %v3780_v1 = vpop.permute.xlu0 %598  ;;  %1435 = vperm.xlu1 %2876, %v557_v51   ;;  %v1686_v51 = vld [vmem:[%s5151_s2 + $0x348] sm:$0xff]  ;;  %v2730_v7 = vpack.c.bf16 %v1691_v50, %v1687_v2 }
  0x97   :  { %1440 = vperm.xlu0 %2875, %v558_v43   ;;  %2623 = vmatpush1.bf16.msra.mxu0 %v2622_v10  ;;  %v1677_v43 = vld [vmem:[%s5151_s2 + $0x300] sm:$0xff]  ;;  %v2632_v38 = vpack.c.bf16 %v1690_v22, %v1686_v51  ;;  %v143_v51 = vld [vmem:[%s5150_s1 + $0x50] sm:$0xff] }
  0x98   :  { %2719 = vmatpush1.bf16.msra.mxu1 %v2718_v57  ;;  %2625 = vmatprep.subr.bf16.mxu0 %v2624_v35  ;;  %v2630_v15 = vpack.c.bf16 %v1681_v21, %v1677_v43  ;;  %v3887_v10 = vld [vmem:[%s5150_s1 + $0xa0] sm:$0xff]  ;;  %v155_v22 = vld [vmem:[%s5150_s1 + $0xb0] sm:$0xff] }
  0x99   :  { %v3806_v49 = vpop.permute.xlu1 %693  ;;  %2721 = vmatprep.subr.bf16.mxu1 %v2720_v20  ;;  %v1695_v20 = vld [vmem:[%s5151_s2 + $0x390] sm:$0xff] }
  0x9a   :  { %v3808_v19 = vpop.permute.xlu0 %688  ;;  %1450 = vperm.xlu1 %2876, %v560_v9   ;;  %v1698_v9 = vld [vmem:[%s5151_s2 + $0x3a8] sm:$0xff] }
  0x9b   :  { %1455 = vperm.xlu0 %2875, %v561_v63   ;;  %2627 = vmatpush1.bf16.msra.mxu0 %v2626_v5  ;;  %v1694_v63 = vld [vmem:[%s5151_s2 + $0x388] sm:$0xff]  ;;  %v1699_v5 = vld [vmem:[%s5151_s2 + $0x3b0] sm:$0xff] }
  0x9c   :  { %2723 = vmatpush1.bf16.msra.mxu1 %v2722_v32  ;;  %2629 = vmatprep.subr.bf16.mxu0 %v2628_v37  ;;  %v2636_v57 = vpack.c.bf16 %v1698_v9, %v1694_v63  ;;  %v1706_v32 = vld [vmem:[%s5151_s2 + $0x3e8] sm:$0xff]  ;;  %v1701_v37 = vld [vmem:[%s5151_s2 + $0x3c0] sm:$0xff]  ;;  %v295_v63 = vsel %vm229_vm0, %v3887_v10, 0.0  ;;  %v296_v9 = vsel %vm229_vm0, %v3892_v6, 0.0 }
  0x9d   :  { %v3834_v4 = vpop.permute.xlu1 %773  ;;  %2725 = vmatprep.subr.bf16.mxu1 %v2724_v23  ;;  %v2736_v23 = vpack.c.bf16 %v1708_v33, %v1704_v12 }
  0x9e   :  { %v3836_v45 = vpop.permute.xlu0 %768  ;;  %1465 = vperm.xlu1 %2876, %v563_v28   ;;  %v1702_v28 = vld [vmem:[%s5151_s2 + $0x3c8] sm:$0xff] }
  0x9f   :  { %1470 = vperm.xlu0 %2875, %v564_v25   ;;  %2631 = vmatpush1.bf16.msra.mxu0 %v2630_v15  ;;  %v2734_v25 = vpack.c.bf16 %v1699_v5, %v1695_v20  ;;  %v2640_v27 = vpack.c.bf16 %v1706_v32, %v1702_v28  ;;  %v2642_v15 = vpack.c.bf16 %v1705_v40, %v1701_v37  ;;  %v85_v5 = vld [vmem:[%s5149_s0 + $0x180] sm:$0xff]  ;;  %v298_v28 = vsel %vm229_vm0, %v155_v22, 0.0 }
  0xa0   :  { %2727 = vmatpush1.bf16.msra.mxu1 %v2726_v47  ;;  %2633 = vmatprep.subr.bf16.mxu0 %v2632_v38  ;;  %v2738_v47 = vpack.c.bf16 %v1707_v46, %v1703_v11 }
  0xa1   :  { %v3872_v48 = vpop.permute.xlu1 %638  ;;  %2729 = vmatprep.subr.bf16.mxu1 %v2728_v56  ;;  %v178_v56 = vld [vmem:[%s5150_s1 + $0x168] sm:$0xff] }
  0xa2   :  { %5161 = vst [vmem:[#allocation9_spill] sm:$0xff] %v3872_v48  ;;  %v3874_v54 = vpop.permute.xlu0 %578  ;;  %613 = vperm.xlu1 %2876, %v3852_v34   ;;  %v167_v34 = vld [vmem:[%s5150_s1 + $0x110] sm:$0xff]  ;;  %v374_v20 = vsel %vm229_vm0, %v178_v56, 0.0 }
  0xa3   :  { %608 = vperm.xlu0 %2875, %v3847_v44   ;;  %2635 = vmatpush1.bf16.msra.mxu0 %v2634_v0  ;;  %v258_v0 = vadd.f32 %v257_v53, %v256_v52  ;;  %v259_v44 = vsel %vm229_vm0, %v143_v51, 0.0  ;;  %v337_v32 = vsel %vm229_vm0, %v167_v34, 0.0  ;;  %v102_v52 = vld [vmem:[%s5149_s0 + $0x208] sm:$0xff]  ;;  %v156_v53 = vld [vmem:[%s5150_s1 + $0xb8] sm:$0xff] }
  0xa4   :  { %2731 = vmatpush1.bf16.msra.mxu1 %v2730_v7  ;;  %2637 = vmatprep.subr.bf16.mxu0 %v2636_v57  ;;  %v189_v7 = vld [vmem:[%s5150_s1 + $0x1c0] sm:$0xff]  ;;  %v335_v57 = vsel %vm229_vm0, %v166_v3, 0.0 }
  0xa5   :  { %v3912_v35 = vpop.permute.xlu1 %748  ;;  %2733 = vmatprep.subr.bf16.mxu1 %v2732_v59  ;;  %v260_v31 = vadd.f32 %v259_v44, %v258_v0  ;;  %v144_v59 = vld [vmem:[%s5150_s1 + $0x58] sm:$0xff]  ;;  %v300_v44 = vsel %vm229_vm0, %v156_v53, 0.0 }
  0xa6   :  { %5162 = vst [vmem:[#allocation10_spill] sm:$0xff] %v3912_v35  ;;  %v3914_v14 = vpop.permute.xlu0 %718  ;;  %673 = vperm.xlu1 %2876, %v3892_v6   ;;  %v297_v6 = vadd.f32 %v296_v9, %v295_v63 }
  0xa7   :  { %668 = vperm.xlu0 %2875, %v3887_v10   ;;  %2639 = vmatpush1.bf16.msra.mxu0 %v2638_v17  ;;  %v373_v17 = vsel %vm229_vm0, %v177_v39, 0.0  ;;  %v261_v10 = vsel %vm229_vm0, %v144_v59, 0.0 }
  0xa8   :  { %2735 = vmatpush1.bf16.msra.mxu1 %v2734_v25  ;;  %2641 = vmatprep.subr.bf16.mxu0 %v2640_v27  ;;  %v336_v25 = vadd.f32 %v335_v57, %v334_v58  ;;  %v375_v12 = vadd.f32 %v374_v20, %v373_v17  ;;  %v412_v27 = vsel %vm229_vm0, %v189_v7, 0.0  ;;  %v191_v17 = vld [vmem:[%s5150_s1 + $0x1d0] sm:$0xff] }
  0xa9   :  { %v3948_v43 = vpop.permute.xlu1 %828  ;;  %2737 = vmatprep.subr.bf16.mxu1 %v2736_v23  ;;  %v262_v23 = vadd.f32 %v261_v10, %v260_v31 }
  0xaa   :  { %5163 = vst [vmem:[#allocation11_spill] sm:$0xff] %v3948_v43  ;;  %v3950_v21 = vpop.permute.xlu0 %753  ;;  %733 = vperm.xlu1 %2876, %v166_v3   ;;  %v190_v3 = vld [vmem:[%s5150_s1 + $0x1c8] sm:$0xff] }
  0xab   :  { %5164 = vst [vmem:[#allocation12_spill] sm:$0xff] %v3950_v21  ;;  %728 = vperm.xlu0 %2875, %v165_v24   ;;  %2643 = vmatpush1.bf16.msra.mxu0 %v2642_v15  ;;  %v86_v24 = vld [vmem:[%s5149_s0 + $0x188] sm:$0xff]  ;;  %v413_v40 = vsel %vm229_vm0, %v190_v3, 0.0  ;;  %v179_v15 = vld [vmem:[%s5150_s1 + $0x170] sm:$0xff]  ;;  %v263_v63 = vrot.slane %v262_v23, 4 }
  0xac   :  { %2739 = vmatpush1.bf16.msra.mxu1 %v2738_v47  ;;  %v376_v47 = vsel %vm229_vm0, %v179_v15, 0.0  ;;  %v414_v0 = vadd.f32 %v413_v40, %v412_v27 }
  0xad   :  { %v3964_v41 = vpop.permute.xlu1 %603  ;;  %v377_v57 = vadd.f32 %v376_v47, %v375_v12  ;;  %v264_v47 = vadd.f32 %v263_v63, %v262_v23  ;;  %v4104_v23 = vld [vmem:[%s5150_s1 + $0x2f0] sm:$0xff] }
  0xae   :  { %v3966_v38 = vpop.permute.xlu0 %833  ;;  %678 = vperm.xlu1 %2876, %v155_v22   ;;  %v101_v22 = vld [vmem:[%s5149_s0 + $0x200] sm:$0xff] }
  0xaf   :  { %5165 = vst [vmem:[#allocation13_spill] sm:$0xff] %v3966_v38  ;;  %618 = vperm.xlu0 %2875, %v143_v51   ;;  %v299_v51 = vadd.f32 %v298_v28, %v297_v6 }
  0xb1   :  { %v3978_v2 = vpop.permute.xlu1 %698  ;;  %v301_v28 = vadd.f32 %v300_v44, %v299_v51  ;;  %v4094_v44 = vld [vmem:[%s5150_s1 + $0x230] sm:$0xff] }
  0xb2   :  { %v3980_v50 = vpop.permute.xlu0 %663  ;;  %793 = vperm.xlu1 %2876, %v178_v56  }
  0xb3   :  { %788 = vperm.xlu0 %2875, %v177_v39   ;;  %v338_v39 = vadd.f32 %v337_v32, %v336_v25  ;;  %v4063_v25 = vld [vmem:[%s5150_s1 + $0x178] sm:$0xff] }
  0xb4   :  { %v378_v27 = vsel %vm229_vm0, %v4063_v25, 0.0 }
  0xb5   :  { %v809_v26 = vpop.permute.xlu1 %808 }
  0xb6   :  { %v3995_v16 = vpop.permute.xlu0 %778  ;;  %848 = vperm.xlu1 %2876, %v189_v7   ;;  %v1094_v11 = vmul.f32 %v809_v26, %v85_v5  ;;  %v168_v7 = vld [vmem:[%s5150_s1 + $0x118] sm:$0xff]  ;;  %v202_v26 = vld [vmem:[%s5150_s1 + $0x228] sm:$0xff]  ;;  %v415_v5 = vsel %vm229_vm0, %v191_v17, 0.0 }
  0xb7   :  { %738 = vperm.xlu0 %2875, %v167_v34   ;;  %v201_v34 = vld [vmem:[%s5150_s1 + $0x220] sm:$0xff]  ;;  %v452_v6 = vsel %vm229_vm0, %v202_v26, 0.0 }
  0xb8   :  { %v451_v31 = vsel %vm229_vm0, %v201_v34, 0.0 }
  0xb9   :  { %v889_v33 = vpop.permute.xlu1 %888 }
  0xba   :  { %v814_v37 = vpop.permute.xlu0 %813  ;;  %623 = vperm.xlu1 %2876, %v144_v59   ;;  %v339_v59 = vsel %vm229_vm0, %v168_v7, 0.0  ;;  %v1110_v20 = vmul.f32 %v889_v33, %v101_v22  ;;  %v4074_v33 = vld [vmem:[%s5150_s1 + $0x2e0] sm:$0xff] }
  0xbb   :  { %v1095_v46 = vmul.f32 %v814_v37, %v86_v24  ;;  %853 = vperm.xlu0 %2875, %v190_v3   ;;  %v4053_v24 = vld [vmem:[%s5150_s1 + $0x280] sm:$0xff]  ;;  %v4058_v3 = vld [vmem:[%s5150_s1 + $0x288] sm:$0xff] }
  0xbc   :  { %v490_v32 = vsel %vm229_vm0, %v4053_v24, 0.0  ;;  %v491_v12 = vsel %vm229_vm0, %v4058_v3, 0.0  ;;  %v4079_v37 = vld [vmem:[%s5150_s1 + $0x2e8] sm:$0xff] }
  0xbd   :  { %v4029_v56 = vadd.f32 %v1095_v46, %v1094_v11  ;;  %v4038_v9 = vpop.permute.xlu1 %583  ;;  %v529_v11 = vsel %vm229_vm0, %v4074_v33, 0.0  ;;  %v530_v46 = vsel %vm229_vm0, %v4079_v37, 0.0  ;;  %v492_v63 = vadd.f32 %v491_v12, %v490_v32 }
  0xbe   :  { %5167 = vst [vmem:[#allocation15_spill] sm:$0xff] %v4038_v9  ;;  %v894_v58 = vpop.permute.xlu0 %893  ;;  %798 = vperm.xlu1 %2876, %v179_v15   ;;  %v340_v15 = vadd.f32 %v339_v59, %v338_v39  ;;  %v4099_v39 = vld [vmem:[%s5150_s1 + $0x1d8] sm:$0xff]  ;;  %v4113_v59 = vld [vmem:[%s5150_s1 + $0x290] sm:$0xff]  ;;  %v265_v32 = vrot.slane %v264_v47, 2 }
  0xbf   :  { %5166 = vst [vmem:[#allocation14_spill] sm:$0xff] %v4029_v56  ;;  %v1111_v10 = vmul.f32 %v894_v58, %v102_v52  ;;  %683 = vperm.xlu0 %2875, %v156_v53   ;;  %v453_v52 = vadd.f32 %v452_v6, %v451_v31  ;;  %v416_v53 = vadd.f32 %v415_v5, %v414_v0  ;;  %v454_v0 = vsel %vm229_vm0, %v4094_v44, 0.0  ;;  %v4127_v5 = vld [vmem:[%s5150_s1 + $0x298] sm:$0xff] }
  0xc0   :  { %v379_v58 = vadd.f32 %v378_v27, %v377_v57  ;;  %v417_v31 = vsel %vm229_vm0, %v4099_v39, 0.0  ;;  %v302_v57 = vrot.slane %v301_v28, 4  ;;  %v532_v6 = vsel %vm229_vm0, %v4104_v23, 0.0 }
  0xc1   :  { %v4081_v40 = vadd.f32 %v1111_v10, %v1110_v20  ;;  %v4087_v51 = vpop.permute.xlu1 %723  ;;  %v531_v20 = vadd.f32 %v530_v46, %v529_v11  ;;  %v493_v10 = vsel %vm229_vm0, %v4113_v59, 0.0  ;;  %v455_v11 = vadd.f32 %v454_v0, %v453_v52  ;;  %v97_v0 = vld [vmem:[%s5149_s0 + $0x1e0] sm:$0xff] }
  0xc2   :  { %5169 = vst [vmem:[#allocation17_spill] sm:$0xff] %v4087_v51  ;;  %v4089_v22 = vpop.permute.xlu0 %643  ;;  %913 = vperm.xlu1 %2876, %v202_v26   ;;  %v341_v26 = vrot.slane %v340_v15, 4  ;;  %v418_v46 = vadd.f32 %v417_v31, %v416_v53  ;;  %v380_v56 = vrot.slane %v379_v58, 4  ;;  %v494_v43 = vadd.f32 %v493_v10, %v492_v63  ;;  %v62_v53 = vld [vmem:[%s5149_s0 + $0xc8] sm:$0xff]  ;;  %v77_v10 = vld [vmem:[%s5149_s0 + $0x140] sm:$0xff] }
  0xc3   :  { %5168 = vst [vmem:[#allocation16_spill] sm:$0xff] %v4081_v40  ;;  %5170 = vst [vmem:[#allocation18_spill] sm:$0xff] %v4089_v22  ;;  %908 = vperm.xlu0 %2875, %v201_v34   ;;  %v4120_v34 = vld [vmem:[%s5150_s1 + $0x238] sm:$0xff]  ;;  %v533_v35 = vadd.f32 %v532_v6, %v531_v20  ;;  %v495_v52 = vsel %vm229_vm0, %v4127_v5, 0.0  ;;  %v78_v20 = vld [vmem:[%s5149_s0 + $0x148] sm:$0xff]  ;;  %v4162_v6 = vadd.f32 %v265_v32, %v264_v47 }
  0xc4   :  { %v4136_v40 = vld [vmem:[%s5150_s1 + $0x2f8] sm:$0xff]  ;;  %v456_v38 = vsel %vm229_vm0, %v4120_v34, 0.0  ;;  %v342_v63 = vadd.f32 %v341_v26, %v340_v15  ;;  %v419_v15 = vrot.slane %v418_v46, 4  ;;  %v63_v26 = vld [vmem:[%s5149_s0 + $0xd0] sm:$0xff]  ;;  %v381_v22 = vadd.f32 %v380_v56, %v379_v58 }
  0xc5   :  { %v4129_v12 = vpop.permute.xlu1 %838  ;;  %v534_v31 = vsel %vm229_vm0, %v4136_v40, 0.0  ;;  %v496_v48 = vadd.f32 %v495_v52, %v494_v43  ;;  %v1071_v51 = vmul.f32 %v3806_v49, %v62_v53  ;;  %v79_v32 = vld [vmem:[%s5149_s0 + $0x150] sm:$0xff]  ;;  %v1087_v43 = vmul.f32 %v3834_v4, %v78_v20 }
  0xc6   :  { %5171 = vst [vmem:[#allocation19_spill] sm:$0xff] %v4129_v12  ;;  %v4131_v27 = vpop.permute.xlu0 %758  ;;  %858 = vperm.xlu1 %2876, %v191_v17   ;;  %v98_v12 = vld [vmem:[%s5149_s0 + $0x1e8] sm:$0xff]  ;;  %v303_v17 = vadd.f32 %v302_v57, %v301_v28  ;;  %v457_v57 = vadd.f32 %v456_v38, %v455_v11  ;;  %v1086_v49 = vmul.f32 %v3836_v45, %v77_v10  ;;  %v382_v45 = vrot.slane %v381_v22, 2 }
  0xc7   :  { %5172 = vst [vmem:[#allocation20_spill] sm:$0xff] %v4131_v27  ;;  %743 = vperm.xlu0 %2875, %v168_v7   ;;  %v61_v7 = vld [vmem:[%s5149_s0 + $0xc0] sm:$0xff]  ;;  %v114_v11 = vld [vmem:[%s5149_s0 + $0x268] sm:$0xff]  ;;  %v1072_v58 = vmul.f32 %v3978_v2, %v63_v26  ;;  %v420_v53 = vadd.f32 %v419_v15, %v418_v46  ;;  %v497_v2 = vrot.slane %v496_v48, 4 }
  0xc8   :  { %v1070_v47 = vmul.f32 %v3808_v19, %v61_v7  ;;  %v304_v56 = vrot.slane %v303_v17, 2  ;;  %v343_v19 = vrot.slane %v342_v63, 2  ;;  %v458_v7 = vrot.slane %v457_v57, 4 }
  0xc9   :  { %v874_v27 = vpop.permute.xlu1 %873 }
  0xca   :  { %v869_v28 = vpop.permute.xlu0 %868  ;;  %v1107_v21 = vmul.f32 %v874_v27, %v98_v12  ;;  %973 = vperm.xlu1 %2876, %v4058_v3   ;;  %v535_v3 = vadd.f32 %v534_v31, %v533_v35  ;;  %v1196_v4 = vadd.f32 %v1071_v51, %v1070_v47  ;;  %v80_v35 = vld [vmem:[%s5149_s0 + $0x158] sm:$0xff]  ;;  %v1232_v31 = vadd.f32 %v1087_v43, %v1086_v49 }
  0xcb   :  { %968 = vperm.xlu0 %2875, %v4053_v24   ;;  %v1106_v38 = vmul.f32 %v869_v28, %v97_v0  ;;  %v113_v24 = vld [vmem:[%s5149_s0 + $0x260] sm:$0xff]  ;;  %v1088_v0 = vmul.f32 %v3995_v16, %v79_v32  ;;  %v267_v16 = vrot.slane %v4162_v6, 1  ;;  %v305_v10 = vadd.f32 %v304_v56, %v303_v17 }
  0xcc   :  { %v536_v46 = vrot.slane %v535_v3, 4  ;;  %v459_v26 = vadd.f32 %v458_v7, %v457_v57  ;;  %v498_v43 = vadd.f32 %v497_v2, %v496_v48  ;;  %v54_v2 = vld [vmem:[%s5149_s0 + $0x88] sm:$0xff] }
  0xcd   :  { %v4183_v12 = vadd.f32 %v1107_v21, %v1106_v38  ;;  %v954_v27 = vpop.permute.xlu1 %953  ;;  %v64_v21 = vld [vmem:[%s5149_s0 + $0xd8] sm:$0xff]  ;;  %v1233_v47 = vadd.f32 %v1232_v31, %v1088_v0  ;;  %v306_v56 = vrot.slane %v305_v10, 1  ;;  %v42_v0 = vld [vmem:[%s5149_s0 + $0x28] sm:$0xff] }
  0xce   :  { %v949_v52 = vpop.permute.xlu0 %948  ;;  %v1123_v28 = vmul.f32 %v954_v27, %v114_v11  ;;  %918 = vperm.xlu1 %2876, %v4094_v44   ;;  %v344_v44 = vadd.f32 %v343_v19, %v342_v63  ;;  %v421_v11 = vrot.slane %v420_v53, 2  ;;  %v537_v49 = vadd.f32 %v536_v46, %v535_v3  ;;  %v1716_v31 = vld [vmem:[%s5151_s2 + $0x438] sm:$0xff] }
  0xcf   :  { %v1122_v9 = vmul.f32 %v949_v52, %v113_v24  ;;  %803 = vperm.xlu0 %2875, %v4063_v25   ;;  %v1197_v25 = vadd.f32 %v1196_v4, %v1072_v58  ;;  %v383_v24 = vadd.f32 %v382_v45, %v381_v22  ;;  %v460_v57 = vrot.slane %v459_v26, 2 }
  0xd0   :  { %v422_v19 = vadd.f32 %v421_v11, %v420_v53  ;;  %v499_v48 = vrot.slane %v498_v43, 2  ;;  %v538_v22 = vrot.slane %v537_v49, 2  ;;  %v65_v11 = vld [vmem:[%s5149_s0 + $0xe0] sm:$0xff] }
  0xd1   :  { %v4195_v20 = vadd.f32 %v1123_v28, %v1122_v9  ;;  %v784_v51 = vpop.permute.xlu1 %783  ;;  %v384_v3 = vrot.slane %v383_v24, 1  ;;  %v461_v7 = vadd.f32 %v460_v57, %v459_v26  ;;  %v1063_v57 = vmul.f32 %v3651_v55, %v54_v2 }
  0xd2   :  { %v704_v15 = vpop.permute.xlu0 %703  ;;  %v1089_v32 = vmul.f32 %v784_v51, %v80_v35  ;;  %1033 = vperm.xlu1 %2876, %v4079_v37   ;;  %v345_v37 = vrot.slane %v344_v44, 1  ;;  %v423_v53 = vrot.slane %v422_v19, 1  ;;  %v500_v28 = vadd.f32 %v499_v48, %v498_v43  ;;  %v1710_v35 = vld [vmem:[%s5151_s2 + $0x408] sm:$0xff] }
  0xd3   :  { %v1073_v38 = vmul.f32 %v704_v15, %v64_v21  ;;  %1028 = vperm.xlu0 %2875, %v4074_v33   ;;  %v268_v33 = vadd.f32 %v267_v16, %v4162_v6  ;;  %v539_v4 = vadd.f32 %v538_v22, %v537_v49  ;;  %v4221_v45 = vadd.f32 %v384_v3, %v383_v24  ;;  %v1714_v21 = vld [vmem:[%s5151_s2 + $0x428] sm:$0xff]  ;;  %v39_v3 = vld [vmem:[%s5149_s0 + $0x10] sm:$0xff] }
  0xd4   :  { %v4199_v27 = vadd.f32 %v1233_v47, %v1089_v32  ;;  %v4219_v6 = vadd.f32 %v345_v37, %v344_v44  ;;  %v2644_v46 = vpack.c.bf16 %v1714_v21, %v1710_v35  ;;  %v38_v16 = vld [vmem:[%s5149_s0 + $0x8] sm:$0xff]  ;;  %v462_v15 = vrot.slane %v461_v7, 1  ;;  %v53_v47 = vld [vmem:[%s5149_s0 + $0x80] sm:$0xff]  ;;  %v40_v35 = vld [vmem:[%s5149_s0 + $0x18] sm:$0xff] }
  0xd5   :  { %v4201_v9 = vadd.f32 %v1197_v25, %v1073_v38  ;;  %v4203_v17 = vpop.permute.xlu1 %898  ;;  %v37_v25 = vld [vmem:[%s5149_s0] sm:$0xff]  ;;  %v1051_v32 = vmul.f32 %v3653_v36, %v42_v0  ;;  %v66_v38 = vld [vmem:[%s5149_s0 + $0xe8] sm:$0xff]  ;;  %v4266_v49 = vadd.f32 %v423_v53, %v422_v19  ;;  %v55_v36 = vld [vmem:[%s5149_s0 + $0x90] sm:$0xff]  ;;  %v501_v37 = vrot.slane %v500_v28, 1 }
  0xd6   :  { %v4205_v63 = vpop.permute.xlu0 %818  ;;  %978 = vperm.xlu1 %2876, %v4113_v59   ;;  %v307_v59 = vadd.f32 %v306_v56, %v305_v10  ;;  %v43_v10 = vld [vmem:[%s5149_s0 + $0x30] sm:$0xff]  ;;  %v550_v43 = vmax.f32 %v4219_v6, 1.0  ;;  %v44_v56 = vld [vmem:[%s5149_s0 + $0x38] sm:$0xff]  ;;  %2645 = vmatprep.subr.bf16.mxu0 %v2644_v46  ;;  %v1047_v19 = vmul.f32 %v3685_v61, %v38_v16  ;;  %v1046_v55 = vmul.f32 %v3687_v62, %v37_v25 }
  0xd7   :  { %863 = vperm.xlu0 %2875, %v4099_v39   ;;  %v544_v39 = vmax.f32 %v268_v33, 1.0  ;;  %v553_v33 = vmax.f32 %v4221_v45, 1.0  ;;  %v1052_v22 = vmul.f32 %v3780_v1, %v43_v10  ;;  %v1062_v0 = vmul.f32 %v3609_v29, %v53_v47  ;;  %v56_v61 = vld [vmem:[%s5149_s0 + $0x98] sm:$0xff]  ;;  %v50_v29 = vld [vmem:[%s5149_s0 + $0x68] sm:$0xff] }
  0xd8   :  { %v547_v24 = vmax.f32 %v307_v59, 1.0  ;;  %v1074_v59 = vmul.f32 %v3752_v30, %v65_v11  ;;  %v463_v6 = vadd.f32 %v462_v15, %v461_v7  ;;  %v1064_v30 = vmul.f32 %v3778_v8, %v55_v36  ;;  %v5173_v15 = vld [vmem:[#allocation15_spill] sm:$0xff] }
  0xd9   :  { %v4210_v58 = vpop.permute.xlu1 %933  ;;  %v1053_v45 = vmul.f32 %v3964_v41, %v44_v56  ;;  %v556_v7 = vmax.f32 %v4266_v49, 1.0  ;;  %v1178_v21 = vadd.f32 %v1063_v57, %v1062_v0  ;;  %v502_v2 = vadd.f32 %v501_v37, %v500_v28  ;;  %v5176_v37 = vld [vmem:[#allocation18_spill] sm:$0xff] }
  0xda   :  { %v4212_v52 = vpop.permute.xlu0 %928  ;;  %1038 = vperm.xlu1 %2876, %v4104_v23   ;;  %v1712_v23 = vld [vmem:[%s5151_s2 + $0x418] sm:$0xff]  ;;  %v1142_v46 = vadd.f32 %v1047_v19, %v1046_v55  ;;  %v1059_v25 = vmul.f32 %v3720_v60, %v50_v29  ;;  %v559_v60 = vmax.f32 %v463_v6, 1.0 }
  0xdb   :  { %923 = vperm.xlu0 %2875, %v4120_v34   ;;  %v41_v34 = vld [vmem:[%s5149_s0 + $0x20] sm:$0xff]  ;;  %v2740_v26 = vpack.c.bf16 %v1716_v31, %v1712_v23  ;;  %v1048_v23 = vmul.f32 %v3874_v54, %v39_v3  ;;  %v51_v31 = vld [vmem:[%s5149_s0 + $0x70] sm:$0xff] }
  0xdc   :  { %v1050_v48 = vmul.f32 %v3611_v13, %v41_v34  ;;  %v67_v13 = vld [vmem:[%s5149_s0 + $0xf0] sm:$0xff]  ;;  %v68_v34 = vld [vmem:[%s5149_s0 + $0xf8] sm:$0xff] }
  0xdd   :  { %v4250_v44 = vpop.permute.xlu1 %1013  ;;  %2741 = vmatprep.subr.bf16.mxu1 %v2740_v26  ;;  %v1076_v16 = vmul.f32 %v3914_v14, %v67_v13  ;;  %v1049_v26 = vmul.f32 %v5173_v15, %v40_v35  ;;  %v52_v14 = vld [vmem:[%s5149_s0 + $0x78] sm:$0xff] }
  0xde   :  { %v4252_v51 = vpop.permute.xlu0 %1008  ;;  %1370 = vperm.xlu1 %2876, %v544_v39   ;;  %v1075_v39 = vmul.f32 %v3750_v42, %v66_v38  ;;  %v1151_v53 = vadd.f32 %v1051_v32, %v1050_v48  ;;  %v49_v42 = vld [vmem:[%s5149_s0 + $0x60] sm:$0xff]  ;;  %v5174_v38 = vld [vmem:[#allocation17_spill] sm:$0xff] }
  0xdf   :  { %983 = vperm.xlu0 %2875, %v4127_v5   ;;  %v540_v5 = vrot.slane %v539_v4, 1  ;;  %v1058_v54 = vmul.f32 %v3722_v18, %v49_v42  ;;  %v1077_v11 = vmul.f32 %v5174_v38, %v68_v34  ;;  %v73_v34 = vld [vmem:[%s5149_s0 + $0x120] sm:$0xff] }
  0xe0   :  { %v1152_v41 = vadd.f32 %v1151_v53, %v1052_v22  ;;  %v1205_v10 = vadd.f32 %v1075_v39, %v1074_v59  ;;  %v89_v38 = vld [vmem:[%s5149_s0 + $0x1a0] sm:$0xff] }
  0xe1   :  { %v4292_v62 = vpop.permute.xlu1 %843  ;;  %v541_v8 = vadd.f32 %v540_v5, %v539_v4  ;;  %v1179_v4 = vadd.f32 %v1178_v21, %v1064_v30  ;;  %v1169_v36 = vadd.f32 %v1059_v25, %v1058_v54  ;;  %v1061_v5 = vmul.f32 %v5176_v37, %v52_v14 }
  0xe2   :  { %v4294_v1 = vpop.permute.xlu0 %763  ;;  %1043 = vperm.xlu1 %2876, %v4136_v40   ;;  %v1065_v40 = vmul.f32 %v3980_v50, %v56_v61  ;;  %v1153_v32 = vadd.f32 %v1152_v41, %v1053_v45  ;;  %v5175_v50 = vld [vmem:[#allocation9_spill] sm:$0xff]  ;;  %v1206_v49 = vadd.f32 %v1205_v10, %v1076_v16 }
  0xe3   :  { %1385 = vperm.xlu0 %2875, %v547_v24   ;;  %v1060_v18 = vmul.f32 %v5175_v50, %v51_v31  ;;  %v1143_v24 = vadd.f32 %v1142_v46, %v1048_v23  ;;  %v5177_v46 = vld [vmem:[#allocation12_spill] sm:$0xff]  ;;  %v1199_v50 = vrot.slane %v4201_v9, 4 }
  0xe4   :  { %v1180_v57 = vadd.f32 %v1179_v4, %v1065_v40  ;;  %v1154_v55 = vrot.slane %v1153_v32, 4  ;;  %v1207_v22 = vadd.f32 %v1206_v49, %v1077_v11  ;;  %v90_v31 = vld [vmem:[%s5149_s0 + $0x1a8] sm:$0xff]  ;;  %v5178_v4 = vld [vmem:[#allocation10_spill] sm:$0xff] }
  0xe5   :  { %v4321_v47 = vpop.permute.xlu1 %958  ;;  %v1144_v56 = vadd.f32 %v1143_v24, %v1049_v26  ;;  %v1170_v3 = vadd.f32 %v1169_v36, %v1060_v18  ;;  %v76_v26 = vld [vmem:[%s5149_s0 + $0x138] sm:$0xff]  ;;  %v5179_v11 = vld [vmem:[#allocation20_spill] sm:$0xff] }
  0xe6   :  { %v4323_v28 = vpop.permute.xlu0 %878  ;;  %1415 = vperm.xlu1 %2876, %v553_v33   ;;  %v565_v33 = vmax.f32 %v541_v8, 1.0  ;;  %v1181_v0 = vrot.slane %v1180_v57, 4  ;;  %v1155_v6 = vadd.f32 %v1154_v55, %v1153_v32  ;;  %v1208_v53 = vrot.slane %v1207_v22, 4  ;;  %v75_v8 = vld [vmem:[%s5149_s0 + $0x130] sm:$0xff] }
  0xe7   :  { %1400 = vperm.xlu0 %2875, %v550_v43   ;;  %v562_v43 = vmax.f32 %v502_v2, 1.0  ;;  %v1145_v39 = vrot.slane %v1144_v56, 4  ;;  %v1171_v59 = vadd.f32 %v1170_v3, %v1061_v5  ;;  %v1082_v32 = vmul.f32 %v5178_v4, %v73_v34  ;;  %v5180_v18 = vld [vmem:[#allocation13_spill] sm:$0xff] }
  0xe8   :  { %v1182_v29 = vadd.f32 %v1181_v0, %v1180_v57  ;;  %v1156_v21 = vrot.slane %v1155_v6, 2  ;;  %v1209_v23 = vadd.f32 %v1208_v53, %v1207_v22  ;;  %v1084_v14 = vmul.f32 %v5179_v11, %v75_v8  ;;  %v91_v57 = vld [vmem:[%s5149_s0 + $0x1b0] sm:$0xff]  ;;  %v104_v11 = vld [vmem:[%s5149_s0 + $0x218] sm:$0xff] }
  0xe9   :  { %v4331_v48 = vpop.permute.xlu1 %993  ;;  %v1146_v42 = vadd.f32 %v1145_v39, %v1144_v56  ;;  %v1172_v30 = vrot.slane %v1171_v59, 4  ;;  %v1099_v24 = vmul.f32 %v5180_v18, %v90_v31  ;;  %v1085_v5 = vmul.f32 %v4294_v1, %v76_v26  ;;  %v92_v39 = vld [vmem:[%s5149_s0 + $0x1b8] sm:$0xff]  ;;  %v87_v1 = vld [vmem:[%s5149_s0 + $0x190] sm:$0xff] }
  0xea   :  { %v4333_v19 = vpop.permute.xlu0 %988  ;;  %1445 = vperm.xlu1 %2876, %v559_v60   ;;  %v1183_v2 = vrot.slane %v1182_v29, 2  ;;  %v1157_v10 = vadd.f32 %v1156_v21, %v1155_v6  ;;  %v1210_v15 = vrot.slane %v1209_v23, 2  ;;  %v1235_v60 = vrot.slane %v4199_v27, 4  ;;  %v103_v21 = vld [vmem:[%s5149_s0 + $0x210] sm:$0xff] }
  0xeb   :  { %1430 = vperm.xlu0 %2875, %v556_v7   ;;  %v74_v7 = vld [vmem:[%s5149_s0 + $0x128] sm:$0xff]  ;;  %v1147_v16 = vrot.slane %v1146_v42, 2  ;;  %v1173_v40 = vadd.f32 %v1172_v30, %v1171_v59 }
  0xec   :  { %v1083_v41 = vmul.f32 %v5177_v46, %v74_v7  ;;  %v1184_v49 = vadd.f32 %v1183_v2, %v1182_v29  ;;  %v1158_v3 = vrot.slane %v1157_v10, 1  ;;  %v1211_v0 = vadd.f32 %v1210_v15, %v1209_v23  ;;  %v5182_v59 = vld [vmem:[#allocation19_spill] sm:$0xff]  ;;  %v88_v46 = vld [vmem:[%s5149_s0 + $0x198] sm:$0xff] }
  0xed   :  { %v4335_v13 = vpop.permute.xlu1 %903  ;;  %v1148_v56 = vadd.f32 %v1147_v16, %v1146_v42  ;;  %v1174_v37 = vrot.slane %v1173_v40, 2  ;;  %v1100_v6 = vmul.f32 %v5182_v59, %v91_v57  ;;  %v1236_v29 = vadd.f32 %v1235_v60, %v4199_v27  ;;  %v110_v2 = vld [vmem:[%s5149_s0 + $0x248] sm:$0xff]  ;;  %v109_v27 = vld [vmem:[%s5149_s0 + $0x240] sm:$0xff] }
  0xee   :  { %v4337_v61 = vpop.permute.xlu0 %823  ;;  %1475 = vperm.xlu1 %2876, %v565_v33   ;;  %v1223_v36 = vadd.f32 %v1083_v41, %v1082_v32  ;;  %v1200_v42 = vadd.f32 %v1199_v50, %v4201_v9  ;;  %v1185_v7 = vrot.slane %v1184_v49, 1  ;;  %v1101_v9 = vmul.f32 %v4292_v62, %v92_v39  ;;  %v99_v62 = vld [vmem:[%s5149_s0 + $0x1f0] sm:$0xff] }
  0xef   :  { %1460 = vperm.xlu0 %2875, %v562_v43   ;;  %v5181_v43 = vld [vmem:[#allocation11_spill] sm:$0xff]  ;;  %v1149_v23 = vrot.slane %v1148_v56, 1  ;;  %v4392_v34 = vadd.f32 %v1174_v37, %v1173_v40  ;;  %v4406_v16 = vadd.f32 %v1158_v3, %v1157_v10  ;;  %v1212_v40 = vrot.slane %v1211_v0, 1 }
  0xf0   :  { %v1098_v33 = vmul.f32 %v5181_v43, %v89_v38  ;;  %v1224_v53 = vadd.f32 %v1223_v36, %v1084_v14  ;;  %v1096_v15 = vmul.f32 %v4205_v63, %v87_v1  ;;  %v1237_v4 = vrot.slane %v1236_v29, 2  ;;  %v115_v63 = vld [vmem:[%s5149_s0 + $0x270] sm:$0xff] }
  0xf1   :  { %v4339_v45 = vpop.permute.xlu1 %1018  ;;  %v1201_v32 = vrot.slane %v1200_v42, 2  ;;  %v1112_v38 = vmul.f32 %v4203_v17, %v103_v21  ;;  %v4416_v14 = vadd.f32 %v1185_v7, %v1184_v49  ;;  %v1119_v10 = vmul.f32 %v4210_v58, %v110_v2  ;;  %v100_v49 = vld [vmem:[%s5149_s0 + $0x1f8] sm:$0xff] }
  0xf2   :  { %v4341_v35 = vpop.permute.xlu0 %938  ;;  %v1259_v30 = vadd.f32 %v1099_v24, %v1098_v33  ;;  %v1225_v8 = vadd.f32 %v1224_v53, %v1085_v5  ;;  %v1118_v60 = vmul.f32 %v4212_v52, %v109_v27  ;;  %v1097_v17 = vmul.f32 %v4337_v61, %v88_v46  ;;  %v5183_v52 = vld [vmem:[#allocation14_spill] sm:$0xff]  ;;  %v126_v61 = vld [vmem:[%s5149_s0 + $0x2c8] sm:$0xff] }
  0xf3   :  { %v4424_v50 = vadd.f32 %v1149_v23, %v1148_v56  ;;  %v1176_v18 = vrot.slane %v4392_v34, 1  ;;  %v4430_v37 = vadd.f32 %v1212_v40, %v1211_v0  ;;  %v1251_v5 = vadd.f32 %v5183_v52, %v1096_v15  ;;  %v125_v56 = vld [vmem:[%s5149_s0 + $0x2c0] sm:$0xff]  ;;  %v5184_v0 = vld [vmem:[#allocation16_spill] sm:$0xff]  ;;  %v116_v53 = vld [vmem:[%s5149_s0 + $0x278] sm:$0xff] }
  0xf4   :  { %v1260_v26 = vadd.f32 %v1259_v30, %v1100_v6  ;;  %v1226_v57 = vrot.slane %v1225_v8, 4  ;;  %v1108_v43 = vmul.f32 %v4323_v28, %v99_v62  ;;  %v1113_v33 = vmul.f32 %v4335_v13, %v104_v11  ;;  %v122_v30 = vld [vmem:[%s5149_s0 + $0x2a8] sm:$0xff]  ;;  %v111_v13 = vld [vmem:[%s5149_s0 + $0x250] sm:$0xff]  ;;  %v121_v23 = vld [vmem:[%s5149_s0 + $0x2a0] sm:$0xff] }
  0xf5   :  { %v4356_v25 = vpop.permute.xlu1 %963  ;;  %v4441_v3 = vadd.f32 %v1237_v4, %v1236_v29  ;;  %v4443_v39 = vadd.f32 %v1201_v32, %v1200_v42  ;;  %v1287_v59 = vadd.f32 %v5184_v0, %v1112_v38  ;;  %v1124_v6 = vmul.f32 %v4321_v47, %v115_v63  ;;  %v128_v32 = vld [vmem:[%s5149_s0 + $0x2d8] sm:$0xff] }
  0xf6   :  { %v4358_v54 = vpop.permute.xlu0 %883  ;;  %v1261_v24 = vadd.f32 %v1260_v26, %v1101_v9  ;;  %v1304_v1 = vadd.f32 %v1119_v10, %v1118_v60  ;;  %v1252_v28 = vadd.f32 %v1251_v5, %v1097_v17  ;;  %v1135_v42 = vmul.f32 %v4250_v44, %v126_v61  ;;  %v112_v44 = vld [vmem:[%s5149_s0 + $0x258] sm:$0xff] }
  0xf7   :  { %v1109_v29 = vmul.f32 %v4358_v54, %v100_v49  ;;  %v1134_v47 = vmul.f32 %v4252_v51, %v125_v56  ;;  %v1227_v21 = vadd.f32 %v1226_v57, %v1225_v8  ;;  %v1278_v9 = vadd.f32 %v4183_v12, %v1108_v43  ;;  %v127_v54 = vld [vmem:[%s5149_s0 + $0x2d0] sm:$0xff]  ;;  %v124_v38 = vld [vmem:[%s5149_s0 + $0x2b8] sm:$0xff] }
  0xf8   :  { %v1262_v7 = vrot.slane %v1261_v24, 4  ;;  %v1288_v46 = vadd.f32 %v1287_v59, %v1113_v33  ;;  %v1125_v40 = vmul.f32 %v4356_v25, %v116_v53  ;;  %v1314_v51 = vadd.f32 %v4195_v20, %v1124_v6  ;;  %v123_v12 = vld [vmem:[%s5149_s0 + $0x2b0] sm:$0xff] }
  0xf9   :  { %v4375_v55 = vpop.permute.xlu1 %1365  ;;  %v1131_v8 = vmul.f32 %v4331_v48, %v122_v30  ;;  %v1120_v15 = vmul.f32 %v4341_v35, %v111_v13  ;;  %v1130_v26 = vmul.f32 %v4333_v19, %v121_v23  ;;  %v1253_v25 = vrot.slane %v1252_v28, 4 }
  0xfa   :  { %v4377_v22 = vpop.permute.xlu0 %998  ;;  %v1279_v4 = vadd.f32 %v1278_v9, %v1109_v29  ;;  %v1263_v20 = vadd.f32 %v1262_v7, %v1261_v24  ;;  %v1136_v48 = vmul.f32 %v4339_v45, %v127_v54  ;;  %v1289_v19 = vrot.slane %v1288_v46, 4 }
  0xfb   :  { %v1315_v11 = vadd.f32 %v1314_v51, %v1125_v40  ;;  %v1340_v10 = vadd.f32 %v1135_v42, %v1134_v47  ;;  %v1228_v60 = vrot.slane %v1227_v21, 2  ;;  %v1305_v63 = vadd.f32 %v1304_v1, %v1120_v15 }
  0xfc   :  { %v1331_v45 = vadd.f32 %v1131_v8, %v1130_v26  ;;  %v1254_v24 = vadd.f32 %v1253_v25, %v1252_v28  ;;  %v1239_v49 = vrot.slane %v4441_v3, 1  ;;  %v1290_v33 = vadd.f32 %v1289_v19, %v1288_v46 }
  0xfd   :  { %v4404_v41 = vpop.permute.xlu1 %943  ;;  %v1341_v52 = vadd.f32 %v1340_v10, %v1136_v48  ;;  %v1203_v59 = vrot.slane %v4443_v39, 1  ;;  %v1229_v1 = vadd.f32 %v1228_v60, %v1227_v21 }
  0xfe   :  { %v1381_v31 = vpop.permute.xlu0 %1380  ;;  %v1121_v35 = vmul.f32 %v4404_v41, %v112_v44  ;;  %v1280_v41 = vrot.slane %v1279_v4, 4  ;;  %v1255_v30 = vrot.slane %v1254_v24, 2 }
  0xff   :  { %v1204_v21 = vadd.f32 %v1203_v59, %v4443_v39  ;;  %v1230_v8 = vrot.slane %v1229_v1, 1 }
 0x100   :  { %v1306_v5 = vadd.f32 %v1305_v63, %v1121_v35  ;;  %v1281_v28 = vadd.f32 %v1280_v41, %v1279_v4  ;;  %v1256_v15 = vadd.f32 %v1255_v30, %v1254_v24 }
 0x101   :  { %v1361_v58 = vpop.permute.xlu1 %1360 }
 0x102   :  { %v1024_v36 = vpop.permute.xlu0 %1023  ;;  %2877 = vrcp.f32 %v1361_v58  ;;  %v1264_v58 = vrot.slane %v1263_v20, 2  ;;  %v1307_v47 = vrot.slane %v1306_v5, 4 }
 0x103   :  { %v1137_v17 = vmul.f32 %v1024_v36, %v128_v32  ;;  %v1177_v36 = vadd.f32 %v1176_v18, %v4392_v34  ;;  %v1240_v34 = vadd.f32 %v1239_v49, %v4441_v3  ;;  %v1291_v18 = vrot.slane %v1290_v33, 2 }
 0x104   :  { %v1265_v42 = vadd.f32 %v1264_v58, %v1263_v20  ;;  %v1308_v25 = vadd.f32 %v1307_v47, %v1306_v5 }
 0x105   :  { %v1396_v27 = vpop.permute.xlu1 %1395  ;;  %v1342_v6 = vadd.f32 %v1341_v52, %v1137_v17  ;;  %v1292_v48 = vadd.f32 %v1291_v18, %v1290_v33 }
 0x106   :  { %v1376_v2 = vpop.permute.xlu0 %1375  ;;  %v1266_v26 = vrot.slane %v1265_v42, 1  ;;  %v1309_v17 = vrot.slane %v1308_v25, 2 }
 0x107   :  { %2879 = vrcp.f32 %v1376_v2  ;;  %v1343_v40 = vrot.slane %v1342_v6, 4 }
 0x108   :  { %2881 = vrcp.f32 %v4375_v55  ;;  %v1267_v63 = vadd.f32 %v1266_v26, %v1265_v42 }
 0x109   :  { %2883 = vrcp.f32 %v1381_v31  ;;  %v1391_v62 = vpop.permute.xlu1 %1390  ;;  %v1132_v31 = vmul.f32 %v4377_v22, %v123_v12  ;;  %v1316_v22 = vrot.slane %v1315_v11, 4 }
 0x10a   :  { %2885 = vrcp.f32 %v1396_v27  ;;  %v1004_v55 = vpop.permute.xlu0 %1003 }
 0x10b   :  { %2887 = vrcp.f32 %v1391_v62  ;;  %v1133_v57 = vmul.f32 %v1004_v55, %v124_v38  ;;  %v1332_v0 = vadd.f32 %v1331_v45, %v1132_v31  ;;  %v1317_v46 = vadd.f32 %v1316_v22, %v1315_v11 }
 0x10c   :  { %v2878_v43 = vpop.eup %2877  ;;  %v1344_v38 = vadd.f32 %v1343_v40, %v1342_v6  ;;  %v1231_v11 = vadd.f32 %v1230_v8, %v1229_v1  ;;  %v1257_v31 = vrot.slane %v1256_v15, 1 }
 0x10d   :  { %v1406_v56 = vpop.permute.xlu1 %1405  ;;  %v1333_v13 = vadd.f32 %v1332_v0, %v1133_v57  ;;  %v1479_v7 = vmul.f32 %v2878_v43, %v4424_v50  ;;  %v1282_v50 = vrot.slane %v1281_v28, 2  ;;  %v1318_v35 = vrot.slane %v1317_v46, 2 }
 0x10e   :  { %v1411_v61 = vpop.permute.xlu0 %1410  ;;  %v1293_v57 = vrot.slane %v1292_v48, 1  ;;  %v1345_v52 = vrot.slane %v1344_v38, 2 }
 0x10f   :  { %2889 = vrcp.f32 %v1411_v61  ;;  %v1334_v12 = vrot.slane %v1333_v13, 4  ;;  %v1283_v10 = vadd.f32 %v1282_v50, %v1281_v28  ;;  %v1319_v58 = vadd.f32 %v1318_v35, %v1317_v46  ;;  %v1711_v35 = vld [vmem:[%s5151_s2 + $0x410] sm:$0xff] }
 0x110   :  { %2891 = vrcp.f32 %v1406_v56  ;;  %v1258_v56 = vadd.f32 %v1257_v31, %v1256_v15  ;;  %v1294_v1 = vadd.f32 %v1293_v57, %v1292_v48  ;;  %v1724_v31 = vld [vmem:[%s5151_s2 + $0x478] sm:$0xff] }
 0x111   :  { %v2880_v53 = vpop.eup %2879  ;;  %v1421_v27 = vpop.permute.xlu1 %1420  ;;  %v1335_v60 = vadd.f32 %v1334_v12, %v1333_v13  ;;  %v1284_v43 = vrot.slane %v1283_v10, 1  ;;  %v1320_v28 = vrot.slane %v1319_v58, 1  ;;  %v1346_v13 = vadd.f32 %v1345_v52, %v1344_v38  ;;  %v1719_v52 = vld [vmem:[%s5151_s2 + $0x450] sm:$0xff] }
 0x112   :  { %v2882_v29 = vpop.eup %2881  ;;  %v1485_v23 = vmul.f32 %v2880_v53, %v1177_v36  ;;  %v1426_v2 = vpop.permute.xlu0 %1425  ;;  %v1310_v36 = vadd.f32 %v1309_v17, %v1308_v25 }
 0x113   :  { %v2884_v9 = vpop.eup %2883  ;;  %2893 = vrcp.f32 %v1426_v2  ;;  %v1481_v55 = vmul.f32 %v2882_v29, %v4406_v16  ;;  %v1336_v33 = vrot.slane %v1335_v60, 2  ;;  %v1285_v47 = vadd.f32 %v1284_v43, %v1283_v10  ;;  %v1730_v43 = vld [vmem:[%s5151_s2 + $0x4a8] sm:$0xff] }
 0x114   :  { %v2886_v54 = vpop.eup %2885  ;;  %2895 = vrcp.f32 %v1421_v27  ;;  %v1535_v44 = vsel %vm1534_vm1, %v1485_v23, %v1479_v7  ;;  %v1487_v3 = vmul.f32 %v2884_v9, %v4416_v14  ;;  %v1311_v27 = vrot.slane %v1310_v36, 1 }
 0x115   :  { %v2888_v51 = vpop.eup %2887  ;;  %v1436_v20 = vpop.permute.xlu1 %1435  ;;  %v1493_v39 = vmul.f32 %v2886_v54, %v4430_v37  ;;  %v1337_v7 = vadd.f32 %v1336_v33, %v1335_v60  ;;  %v1321_v54 = vadd.f32 %v1320_v28, %v1319_v58  ;;  %v1728_v33 = vld [vmem:[%s5151_s2 + $0x498] sm:$0xff] }
 0x116   :  { %v1491_v4 = vmul.f32 %v2888_v51, %v1204_v21  ;;  %v1441_v32 = vpop.permute.xlu0 %1440  ;;  %v1557_v37 = vsel %vm1534_vm1, %v1487_v3, %v1481_v55  ;;  %v1347_v21 = vrot.slane %v1346_v13, 1  ;;  %v1312_v50 = vadd.f32 %v1311_v27, %v1310_v36  ;;  %v1709_v3 = vld [vmem:[%s5151_s2 + $0x400] sm:$0xff]  ;;  %v1718_v55 = vld [vmem:[%s5151_s2 + $0x448] sm:$0xff] }
 0x117   :  { %2897 = vrcp.f32 %v1441_v32  ;;  %v1558_v16 = vsel %vm1536_vm2, %v1493_v39, %v1557_v37  ;;  %v1338_v51 = vrot.slane %v1337_v7, 1  ;;  %v1715_v39 = vld [vmem:[%s5151_s2 + $0x430] sm:$0xff]  ;;  %v1721_v37 = vld [vmem:[%s5151_s2 + $0x460] sm:$0xff] }
 0x118   :  { %2899 = vrcp.f32 %v1436_v20  ;;  %v1537_v62 = vsel %vm1536_vm2, %v1491_v4, %v1535_v44  ;;  %v1713_v4 = vld [vmem:[%s5151_s2 + $0x420] sm:$0xff]  ;;  %v1348_v32 = vadd.f32 %v1347_v21, %v1346_v13  ;;  %v1727_v13 = vld [vmem:[%s5151_s2 + $0x490] sm:$0xff] }
 0x119   :  { %v2890_v19 = vpop.eup %2889  ;;  %v1451_v41 = vpop.permute.xlu1 %1450  ;;  %v1733_v21 = vld [vmem:[%s5151_s2 + $0x4c0] sm:$0xff] }
 0x11a   :  { %v2892_v14 = vpop.eup %2891  ;;  %v1499_v45 = vmul.f32 %v2890_v19, %v1240_v34  ;;  %v1456_v24 = vpop.permute.xlu0 %1455  ;;  %v1722_v19 = vld [vmem:[%s5151_s2 + $0x468] sm:$0xff] }
 0x11b   :  { %v1497_v49 = vmul.f32 %v2892_v14, %v1231_v11  ;;  %2901 = vrcp.f32 %v1456_v24  ;;  %v1720_v11 = vld [vmem:[%s5151_s2 + $0x458] sm:$0xff]  ;;  %v2742_v24 = vpack.c.bf16 %v1715_v39, %v1711_v35  ;;  %v1741_v39 = vld [vmem:[%s5151_s2 + $0x500] sm:$0xff] }
 0x11c   :  { %2903 = vrcp.f32 %v1451_v41  ;;  %v1559_v5 = vsel %vm1538_vm3, %v1499_v45, %v1558_v16  ;;  %v2646_v45 = vpack.c.bf16 %v1713_v4, %v1709_v3  ;;  %v1717_v41 = vld [vmem:[%s5151_s2 + $0x440] sm:$0xff]  ;;  %v2648_v16 = vpack.c.bf16 %v1722_v19, %v1718_v55  ;;  %v1744_v3 = vld [vmem:[%s5151_s2 + $0x518] sm:$0xff]  ;;  %v1743_v19 = vld [vmem:[%s5151_s2 + $0x510] sm:$0xff] }
 0x11d   :  { %v2894_v61 = vpop.eup %2893  ;;  %v1539_v22 = vsel %vm1538_vm3, %v1497_v49, %v1537_v62  ;;  %v1466_v53 = vpop.permute.xlu1 %1465  ;;  %v1339_v62 = vadd.f32 %v1338_v51, %v1337_v7  ;;  %v2744_v58 = vpack.c.bf16 %v1724_v31, %v1720_v11  ;;  %v1736_v7 = vld [vmem:[%s5151_s2 + $0x4d8] sm:$0xff]  ;;  %v1745_v55 = vld [vmem:[%s5151_s2 + $0x520] sm:$0xff]  ;;  %v1747_v11 = vld [vmem:[%s5151_s2 + $0x530] sm:$0xff] }
 0x11e   :  { %v2896_v0 = vpop.eup %2895  ;;  %v1505_v59 = vmul.f32 %v2894_v61, %v1267_v63  ;;  %v1471_v6 = vpop.permute.xlu0 %1470  ;;  %v1726_v61 = vld [vmem:[%s5151_s2 + $0x488] sm:$0xff]  ;;  %v1748_v4 = vld [vmem:[%s5151_s2 + $0x538] sm:$0xff] }
 0x11f   :  { %v1503_v30 = vmul.f32 %v2896_v0, %v1258_v56  ;;  %2905 = vrcp.f32 %v1471_v6  ;;  %v1750_v31 = vld [vmem:[%s5151_s2 + $0x548] sm:$0xff] }
 0x120   :  { %2907 = vrcp.f32 %v1466_v53  ;;  %v1560_v29 = vsel %vm1540_vm4, %v1505_v59, %v1559_v5  ;;  %v1723_v5 = vld [vmem:[%s5151_s2 + $0x470] sm:$0xff]  ;;  %v2650_v59 = vpack.c.bf16 %v1721_v37, %v1717_v41  ;;  %v1725_v53 = vld [vmem:[%s5151_s2 + $0x480] sm:$0xff]  ;;  %v2662_v41 = vpack.c.bf16 %v1745_v55, %v1741_v39  ;;  %v2132_v39 = vld [vmem:[%s5153_s4 + $0x188] sm:$0xff] }
 0x121   :  { %v2898_v42 = vpop.eup %2897  ;;  %v1541_v23 = vsel %vm1540_vm4, %v1503_v30, %v1539_v22  ;;  %v4508_v34 = vpop.permute.xlu1 %613  ;;  %v1732_v22 = vld [vmem:[%s5151_s2 + $0x4b8] sm:$0xff]  ;;  %v2746_v6 = vpack.c.bf16 %v1723_v5, %v1719_v52  ;;  %v2652_v30 = vpack.c.bf16 %v1730_v43, %v1726_v61  ;;  %v2758_v37 = vpack.c.bf16 %v1747_v11, %v1743_v19  ;;  %v1751_v52 = vld [vmem:[%s5151_s2 + $0x550] sm:$0xff]  ;;  %v1758_v61 = vld [vmem:[%s5151_s2 + $0x588] sm:$0xff] }
 0x122   :  { %v2900_v2 = vpop.eup %2899  ;;  %v4506_v9 = vpop.permute.xlu0 %608  ;;  %v1511_v18 = vmul.f32 %v2898_v42, %v1294_v1  ;;  %v1729_v1 = vld [vmem:[%s5151_s2 + $0x4a0] sm:$0xff]  ;;  %v2748_v28 = vpack.c.bf16 %v1732_v22, %v1728_v33  ;;  %v1734_v42 = vld [vmem:[%s5151_s2 + $0x4c8] sm:$0xff]  ;;  %v1755_v5 = vld [vmem:[%s5151_s2 + $0x570] sm:$0xff] }
 0x123   :  { %v1509_v46 = vmul.f32 %v2900_v2, %v1285_v47  ;;  %v1738_v47 = vld [vmem:[%s5151_s2 + $0x4e8] sm:$0xff]  ;;  %v3000_v2 = vmov 0.0   ;;  %v1760_v43 = vld [vmem:[%s5151_s2 + $0x598] sm:$0xff] }
 0x124   :  { %v1561_v40 = vsel %vm1542_vm5, %v1511_v18, %v1560_v29  ;;  %v1731_v29 = vld [vmem:[%s5151_s2 + $0x4b0] sm:$0xff]  ;;  %v1764_v33 = vld [vmem:[%s5151_s2 + $0x5b8] sm:$0xff] }
 0x125   :  { %v2902_v44 = vpop.eup %2901  ;;  %v1543_v8 = vsel %vm1542_vm5, %v1509_v46, %v1541_v23  ;;  %v4514_v26 = vpop.permute.xlu1 %673  ;;  %v1740_v23 = vld [vmem:[%s5151_s2 + $0x4f8] sm:$0xff]  ;;  %v2654_v46 = vpack.c.bf16 %v1729_v1, %v1725_v53  ;;  %v2762_v53 = vpack.c.bf16 %v1755_v5, %v1751_v52  ;;  %v1757_v1 = vld [vmem:[%s5151_s2 + $0x580] sm:$0xff] }
 0x126   :  { %v2904_v15 = vpop.eup %2903  ;;  %v4512_v12 = vpop.permute.xlu0 %668  ;;  %v1517_v25 = vmul.f32 %v2902_v44, %v1321_v54  ;;  %v2750_v54 = vpack.c.bf16 %v1731_v29, %v1727_v13  ;;  %v2656_v44 = vpack.c.bf16 %v1738_v47, %v1734_v42  ;;  %v2752_v51 = vpack.c.bf16 %v1740_v23, %v1736_v7  ;;  %v1759_v29 = vld [vmem:[%s5151_s2 + $0x590] sm:$0xff]  ;;  %v1766_v47 = vld [vmem:[%s5151_s2 + $0x5c8] sm:$0xff]  ;;  %v1768_v23 = vld [vmem:[%s5151_s2 + $0x5d8] sm:$0xff] }
 0x127   :  { %v1515_v48 = vmul.f32 %v2904_v15, %v1312_v50  ;;  %v1739_v15 = vld [vmem:[%s5151_s2 + $0x4f0] sm:$0xff]  ;;  %v1742_v50 = vld [vmem:[%s5151_s2 + $0x508] sm:$0xff]  ;;  %v2764_v13 = vpack.c.bf16 %v1764_v33, %v1760_v43 }
 0x128   :  { %v1562_v20 = vsel %vm1544_vm6, %v1517_v25, %v1561_v40  ;;  %v1737_v40 = vld [vmem:[%s5151_s2 + $0x4e0] sm:$0xff]  ;;  %v1746_v25 = vld [vmem:[%s5151_s2 + $0x528] sm:$0xff]  ;;  %v1763_v42 = vld [vmem:[%s5151_s2 + $0x5b0] sm:$0xff] }
 0x129   :  { %v2906_v38 = vpop.eup %2905  ;;  %v4543_v14 = vpop.permute.xlu1 %733  ;;  %v1545_v49 = vsel %vm1544_vm6, %v1515_v48, %v1543_v8  ;;  %v1735_v8 = vld [vmem:[%s5151_s2 + $0x4d0] sm:$0xff]  ;;  %v2658_v48 = vpack.c.bf16 %v1737_v40, %v1733_v21  ;;  %v1770_v7 = vld [vmem:[%s5151_s2 + $0x5e8] sm:$0xff] }
 0x12a   :  { %v2908_v10 = vpop.eup %2907  ;;  %v4541_v60 = vpop.permute.xlu0 %728  ;;  %v1523_v63 = vmul.f32 %v2906_v38, %v1348_v32  ;;  %v2754_v35 = vpack.c.bf16 %v1739_v15, %v1735_v8  ;;  %v2660_v38 = vpack.c.bf16 %v1746_v25, %v1742_v50  ;;  %v1769_v8 = vld [vmem:[%s5151_s2 + $0x5e0] sm:$0xff]  ;;  %v2672_v15 = vpack.c.bf16 %v1770_v7, %v1766_v47  ;;  %v1767_v25 = vld [vmem:[%s5151_s2 + $0x5d0] sm:$0xff] }
 0x12b   :  { %v1521_v17 = vmul.f32 %v2908_v10, %v1339_v62  ;;  %v2756_v62 = vpack.c.bf16 %v1748_v4, %v1744_v3  ;;  %v1754_v10 = vld [vmem:[%s5151_s2 + $0x568] sm:$0xff]  ;;  %v1771_v3 = vld [vmem:[%s5151_s2 + $0x5f0] sm:$0xff]  ;;  %v2099_v4 = vld [vmem:[%s5153_s4 + $0x80] sm:$0xff] }
 0x12c   :  { %v1563_v57 = vsel %vm1546_vm7, %v1523_v63, %v1562_v20  ;;  %v1752_v63 = vld [vmem:[%s5151_s2 + $0x558] sm:$0xff]  ;;  %v2770_v19 = vpack.c.bf16 %v1771_v3, %v1767_v25  ;;  %v71_v33 = vld [vmem:[%s5149_s0 + $0x110] sm:$0xff] }
 0x12d   :  { %1859 = vmatprep.mubr.f32.mxu0 %v1563_v57  ;;  %2001 = vmatprep.mubr.f32.mxu1 %v1563_v57  ;;  %v1547_v56 = vsel %vm1546_vm7, %v1521_v17, %v1545_v49  ;;  %v4574_v36 = vpop.permute.xlu1 %678  ;;  %v1756_v17 = vld [vmem:[%s5151_s2 + $0x578] sm:$0xff]  ;;  %v1749_v57 = vld [vmem:[%s5151_s2 + $0x540] sm:$0xff] }
 0x12e   :  { %v4572_v0 = vpop.permute.xlu0 %618  ;;  %1860 = vmatmul.mubr.f32.vlgmr.msra.gmra.mrb[0].mxu0 %v1547_v56  ;;  %2002 = vmatmul.mubr.f32.vlgmr.msra.gmra.mrb[0].mxu1 %v1547_v56  ;;  %v1753_v49 = vld [vmem:[%s5151_s2 + $0x560] sm:$0xff]  ;;  %v1762_v56 = vld [vmem:[%s5151_s2 + $0x5a8] sm:$0xff] }
 0x12f   :  { %2647 = vmatpush1.bf16.msra.mxu0 %v2646_v45  ;;  %2743 = vmatpush1.bf16.msra.mxu1 %v2742_v24 }
 0x130   :  { %2649 = vmatprep.subr.bf16.mxu0 %v2648_v16  ;;  %2745 = vmatprep.subr.bf16.mxu1 %v2744_v58  ;;  %v2664_v16 = vpack.c.bf16 %v1754_v10, %v1750_v31  ;;  %v2760_v58 = vpack.c.bf16 %v1756_v17, %v1752_v63  ;;  %v57_v10 = vld [vmem:[%s5149_s0 + $0xa0] sm:$0xff]  ;;  %v58_v63 = vld [vmem:[%s5149_s0 + $0xa8] sm:$0xff] }
 0x131   :  { %1930 = vmatprep.mubr.f32.mxu0 %v3000_v2  ;;  %2072 = vmatprep.mubr.f32.mxu1 %v3000_v2  ;;  %v4604_v18 = vpop.permute.xlu1 %793  ;;  %v45_v17 = vld [vmem:[%s5149_s0 + $0x40] sm:$0xff]  ;;  %v1066_v52 = vmul.f32 %v4512_v12, %v57_v10  ;;  %v1067_v5 = vmul.f32 %v4514_v26, %v58_v63  ;;  %v60_v12 = vld [vmem:[%s5149_s0 + $0xb8] sm:$0xff] }
 0x132   :  { %v4602_v27 = vpop.permute.xlu0 %788 }
 0x133   :  { %2651 = vmatpush1.bf16.msra.mxu0 %v2650_v59  ;;  %2747 = vmatpush1.bf16.msra.mxu1 %v2746_v6  ;;  %v2666_v6 = vpack.c.bf16 %v1753_v49, %v1749_v57  ;;  %v69_v49 = vld [vmem:[%s5149_s0 + $0x100] sm:$0xff] }
 0x134   :  { %2653 = vmatprep.subr.bf16.mxu0 %v2652_v30  ;;  %2749 = vmatprep.subr.bf16.mxu1 %v2748_v28  ;;  %v1761_v30 = vld [vmem:[%s5151_s2 + $0x5a0] sm:$0xff]  ;;  %v2668_v28 = vpack.c.bf16 %v1762_v56, %v1758_v61  ;;  %v47_v61 = vld [vmem:[%s5149_s0 + $0x50] sm:$0xff]  ;;  %v1054_v56 = vmul.f32 %v4506_v9, %v45_v17  ;;  %v1078_v26 = vmul.f32 %v4541_v60, %v69_v49  ;;  %v48_v60 = vld [vmem:[%s5149_s0 + $0x58] sm:$0xff] }
 0x135   :  { %v4632_v20 = vpop.permute.xlu1 %848  ;;  %v2670_v40 = vpack.c.bf16 %v1761_v30, %v1757_v1  ;;  %v81_v9 = vld [vmem:[%s5149_s0 + $0x160] sm:$0xff] }
 0x136   :  { %v4630_v32 = vpop.permute.xlu0 %738  ;;  %v1090_v7 = vmul.f32 %v4602_v27, %v81_v9  ;;  %v95_v27 = vld [vmem:[%s5149_s0 + $0x1d0] sm:$0xff] }
 0x137   :  { %2655 = vmatpush1.bf16.msra.mxu0 %v2654_v46  ;;  %2751 = vmatpush1.bf16.msra.mxu1 %v2750_v54  ;;  %v1772_v46 = vld [vmem:[%s5151_s2 + $0x5f8] sm:$0xff] }
 0x138   :  { %2657 = vmatprep.subr.bf16.mxu0 %v2656_v44  ;;  %2753 = vmatprep.subr.bf16.mxu1 %v2752_v51  ;;  %v2766_v44 = vpack.c.bf16 %v1763_v42, %v1759_v29  ;;  %v1765_v51 = vld [vmem:[%s5151_s2 + $0x5c0] sm:$0xff]  ;;  %v2768_v50 = vpack.c.bf16 %v1772_v46, %v1768_v23  ;;  %v94_v29 = vld [vmem:[%s5149_s0 + $0x1c8] sm:$0xff] }
 0x139   :  { %v4660_v24 = vpop.permute.xlu1 %623  ;;  %v105_v46 = vld [vmem:[%s5149_s0 + $0x220] sm:$0xff] }
 0x13a   :  { %v4658_v45 = vpop.permute.xlu0 %853 }
 0x13b   :  { %2659 = vmatpush1.bf16.msra.mxu0 %v2658_v48  ;;  %2755 = vmatpush1.bf16.msra.mxu1 %v2754_v35  ;;  %v2100_v48 = vld [vmem:[%s5153_s4 + $0x88] sm:$0xff]  ;;  %v2131_v35 = vld [vmem:[%s5153_s4 + $0x180] sm:$0xff]  ;;  %v1103_v3 = vmul.f32 %v4658_v45, %v94_v29  ;;  %v131_v29 = vld [vmem:[%s5149_s0 + $0x2f0] sm:$0xff] }
 0x13c   :  { %2661 = vmatprep.subr.bf16.mxu0 %v2660_v38  ;;  %2757 = vmatprep.subr.bf16.mxu1 %v2756_v62  ;;  %v2674_v62 = vpack.c.bf16 %v1769_v8, %v1765_v51  ;;  %v2772_v11 = vpack.c.bf16 %v2100_v48, %v2099_v4  ;;  %v2804_v31 = vpack.c.bf16 %v2132_v39, %v2131_v35 }
 0x13d   :  { %v4688_v59 = vpop.permute.xlu1 %798  ;;  %v1057_v51 = vmul.f32 %v4660_v24, %v48_v60 }
 0x13e   :  { %v4686_v22 = vpop.permute.xlu0 %683 }
 0x13f   :  { %2663 = vmatpush1.bf16.msra.mxu0 %v2662_v41  ;;  %2759 = vmatpush1.bf16.msra.mxu1 %v2758_v37  ;;  %v46_v41 = vld [vmem:[%s5149_s0 + $0x48] sm:$0xff]  ;;  %v1069_v42 = vmul.f32 %v4686_v22, %v60_v12  ;;  %v93_v22 = vld [vmem:[%s5149_s0 + $0x1c0] sm:$0xff] }
 0x140   :  { %2665 = vmatprep.subr.bf16.mxu0 %v2664_v16  ;;  %2761 = vmatprep.subr.bf16.mxu1 %v2760_v58  ;;  %v70_v16 = vld [vmem:[%s5149_s0 + $0x108] sm:$0xff]  ;;  %v59_v58 = vld [vmem:[%s5149_s0 + $0xb0] sm:$0xff]  ;;  %v1055_v43 = vmul.f32 %v4508_v34, %v46_v41 }
 0x141   :  { %v4716_v21 = vpop.permute.xlu1 %913  ;;  %v82_v34 = vld [vmem:[%s5149_s0 + $0x168] sm:$0xff] }
 0x142   :  { %v4714_v54 = vpop.permute.xlu0 %908  ;;  %v1160_v47 = vadd.f32 %v1055_v43, %v1054_v56  ;;  %v1091_v23 = vmul.f32 %v4604_v18, %v82_v34  ;;  %v84_v18 = vld [vmem:[%s5149_s0 + $0x178] sm:$0xff]  ;;  %v129_v34 = vld [vmem:[%s5149_s0 + $0x2e0] sm:$0xff] }
 0x143   :  { %2667 = vmatpush1.bf16.msra.mxu0 %v2666_v6  ;;  %2763 = vmatpush1.bf16.msra.mxu1 %v2762_v53  ;;  %v1079_v6 = vmul.f32 %v4543_v14, %v70_v16  ;;  %v1068_v53 = vmul.f32 %v4574_v36, %v59_v58  ;;  %v72_v14 = vld [vmem:[%s5149_s0 + $0x118] sm:$0xff]  ;;  %v1187_v36 = vadd.f32 %v1067_v5, %v1066_v52 }
 0x144   :  { %2669 = vmatprep.subr.bf16.mxu0 %v2668_v28  ;;  %2765 = vmatprep.subr.bf16.mxu1 %v2764_v13  ;;  %v1056_v28 = vmul.f32 %v4572_v0, %v47_v61  ;;  %v1080_v13 = vmul.f32 %v4630_v32, %v71_v33  ;;  %v83_v0 = vld [vmem:[%s5149_s0 + $0x170] sm:$0xff]  ;;  %v106_v32 = vld [vmem:[%s5149_s0 + $0x228] sm:$0xff]  ;;  %v1114_v24 = vmul.f32 %v4714_v54, %v105_v46  ;;  %v117_v54 = vld [vmem:[%s5149_s0 + $0x280] sm:$0xff] }
 0x145   :  { %v4742_v38 = vpop.permute.xlu1 %858  ;;  %v1092_v4 = vmul.f32 %v4688_v59, %v83_v0  ;;  %v1115_v39 = vmul.f32 %v4716_v21, %v106_v32  ;;  %v118_v21 = vld [vmem:[%s5149_s0 + $0x288] sm:$0xff]  ;;  %v108_v5 = vld [vmem:[%s5149_s0 + $0x238] sm:$0xff] }
 0x146   :  { %v744_v55 = vpop.permute.xlu0 %743  ;;  %v1161_v25 = vadd.f32 %v1160_v47, %v1056_v28  ;;  %v1104_v45 = vmul.f32 %v4742_v38, %v95_v27  ;;  %v119_v38 = vld [vmem:[%s5149_s0 + $0x290] sm:$0xff] }
 0x147   :  { %2671 = vmatpush1.bf16.msra.mxu0 %v2670_v40  ;;  %2767 = vmatpush1.bf16.msra.mxu1 %v2766_v44  ;;  %v1214_v40 = vadd.f32 %v1079_v6, %v1078_v26  ;;  %v1188_v44 = vadd.f32 %v1187_v36, %v1068_v53  ;;  %v1081_v8 = vmul.f32 %v744_v55, %v72_v14  ;;  %v107_v55 = vld [vmem:[%s5149_s0 + $0x230] sm:$0xff] }
 0x148   :  { %2673 = vmatprep.subr.bf16.mxu0 %v2672_v15  ;;  %2769 = vmatprep.subr.bf16.mxu1 %v2768_v50  ;;  %v1295_v52 = vadd.f32 %v1115_v39, %v1114_v24 }
 0x149   :  { %v4758_v57 = vpop.permute.xlu1 %973  ;;  %v1215_v48 = vadd.f32 %v1214_v40, %v1080_v13  ;;  %v1189_v35 = vadd.f32 %v1188_v44, %v1069_v42 }
 0x14a   :  { %v4756_v37 = vpop.permute.xlu0 %968  ;;  %v1127_v43 = vmul.f32 %v4758_v57, %v118_v21 }
 0x14b   :  { %2675 = vmatpush1.bf16.msra.mxu0 %v2674_v62  ;;  %2771 = vmatpush1.bf16.msra.mxu1 %v2770_v19  ;;  %v96_v62 = vld [vmem:[%s5149_s0 + $0x1d8] sm:$0xff]  ;;  %v1241_v19 = vadd.f32 %v1091_v23, %v1090_v7  ;;  %v1216_v10 = vadd.f32 %v1215_v48, %v1081_v8  ;;  %v1126_v56 = vmul.f32 %v4756_v37, %v117_v54 }
 0x14c   :  { %2773 = vmatprep.subr.bf16.mxu0 %v2772_v11  ;;  %2805 = vmatprep.subr.bf16.mxu1 %v2804_v31  ;;  %v1102_v11 = vmul.f32 %v4632_v20, %v93_v22  ;;  %v1162_v31 = vadd.f32 %v1161_v25, %v1057_v51  ;;  %v1190_v20 = vrot.slane %v1189_v35, 4  ;;  %v120_v37 = vld [vmem:[%s5149_s0 + $0x298] sm:$0xff] }
 0x14d   :  { %v919_v30 = vpop.permute.xlu1 %918  ;;  %v1242_v49 = vadd.f32 %v1241_v19, %v1092_v4  ;;  %v1217_v26 = vrot.slane %v1216_v10, 4  ;;  %v1322_v14 = vadd.f32 %v1127_v43, %v1126_v56  ;;  %v132_v25 = vld [vmem:[%s5149_s0 + $0x2f8] sm:$0xff] }
 0x14e   :  { %v804_v1 = vpop.permute.xlu0 %803  ;;  %v1268_v41 = vadd.f32 %v1103_v3, %v1102_v11  ;;  %v1116_v16 = vmul.f32 %v919_v30, %v107_v55  ;;  %v1163_v12 = vrot.slane %v1162_v31, 4  ;;  %v1191_v57 = vadd.f32 %v1190_v20, %v1189_v35 }
 0x14f   :  { %v1093_v59 = vmul.f32 %v804_v1, %v84_v18  ;;  %v130_v1 = vld [vmem:[%s5149_s0 + $0x2e8] sm:$0xff]  ;;  %v1218_v46 = vadd.f32 %v1217_v26, %v1216_v10 }
 0x150   :  { %v1269_v61 = vadd.f32 %v1268_v41, %v1104_v45  ;;  %v1296_v9 = vadd.f32 %v1295_v52, %v1116_v16  ;;  %v1164_v42 = vadd.f32 %v1163_v12, %v1162_v31  ;;  %v1192_v51 = vrot.slane %v1191_v57, 2 }
 0x151   :  { %v1034_v50 = vpop.permute.xlu1 %1033  ;;  %v1243_v33 = vadd.f32 %v1242_v49, %v1093_v59 }
 0x152   :  { %v1029_v15 = vpop.permute.xlu0 %1028  ;;  %v1139_v47 = vmul.f32 %v1034_v50, %v130_v1  ;;  %v1219_v50 = vrot.slane %v1218_v46, 2 }
 0x153   :  { %v1244_v36 = vrot.slane %v1243_v33, 4  ;;  %v1138_v0 = vmul.f32 %v1029_v15, %v129_v34  ;;  %v1165_v15 = vrot.slane %v1164_v42, 2 }
 0x154   :  { %v1220_v54 = vadd.f32 %v1219_v50, %v1218_v46  ;;  %v2116_v50 = vld [vmem:[%s5153_s4 + $0x108] sm:$0xff] }
 0x155   :  { %v979_v17 = vpop.permute.xlu1 %978  ;;  %v1245_v8 = vadd.f32 %v1244_v36, %v1243_v33  ;;  %v1349_v3 = vadd.f32 %v1139_v47, %v1138_v0  ;;  %v1166_v10 = vadd.f32 %v1165_v15, %v1164_v42  ;;  %v2115_v15 = vld [vmem:[%s5153_s4 + $0x100] sm:$0xff] }
 0x156   :  { %v864_v63 = vpop.permute.xlu0 %863  ;;  %v1128_v28 = vmul.f32 %v979_v17, %v119_v38 }
 0x157   :  { %v1105_v58 = vmul.f32 %v864_v63, %v96_v62  ;;  %v1193_v62 = vadd.f32 %v1192_v51, %v1191_v57  ;;  %v1246_v19 = vrot.slane %v1245_v8, 2  ;;  %v1167_v38 = vrot.slane %v1166_v10, 1 }
 0x158   :  { %v1323_v40 = vadd.f32 %v1322_v14, %v1128_v28 }
 0x159   :  { %v1039_v53 = vpop.permute.xlu1 %1038  ;;  %v1270_v30 = vadd.f32 %v1269_v61, %v1105_v58  ;;  %v1194_v41 = vrot.slane %v1193_v62, 1  ;;  %v1247_v49 = vadd.f32 %v1246_v19, %v1245_v8  ;;  %v1168_v1 = vadd.f32 %v1167_v38, %v1166_v10  ;;  %v2134_v19 = vld [vmem:[%s5153_s4 + $0x198] sm:$0xff]  ;;  %v2104_v38 = vld [vmem:[%s5153_s4 + $0xa8] sm:$0xff] }
 0x15a   :  { %v924_v6 = vpop.permute.xlu0 %923  ;;  %v1140_v22 = vmul.f32 %v1039_v53, %v131_v29 }
 0x15b   :  { %v1117_v60 = vmul.f32 %v924_v6, %v108_v5  ;;  %v1271_v32 = vrot.slane %v1270_v30, 4  ;;  %v1221_v5 = vrot.slane %v1220_v54, 1  ;;  %v1195_v33 = vadd.f32 %v1194_v41, %v1193_v62  ;;  %v2133_v62 = vld [vmem:[%s5153_s4 + $0x190] sm:$0xff] }
 0x15c   :  { %v1350_v24 = vadd.f32 %v1349_v3, %v1140_v22  ;;  %v1248_v12 = vrot.slane %v1247_v49, 1  ;;  %v2084_v3 = vld [vmem:[%s5153_s4 + $0x8] sm:$0xff] }
 0x15d   :  { %v1297_v13 = vadd.f32 %v1296_v9, %v1117_v60  ;;  %v1371_v23 = vpop.permute.xlu1 %1370  ;;  %v1272_v35 = vadd.f32 %v1271_v32, %v1270_v30  ;;  %v1222_v28 = vadd.f32 %v1221_v5, %v1220_v54  ;;  %v2806_v54 = vpack.c.bf16 %v2116_v50, %v2115_v15  ;;  %v2135_v5 = vld [vmem:[%s5153_s4 + $0x1a0] sm:$0xff]  ;;  %v2093_v50 = vld [vmem:[%s5153_s4 + $0x50] sm:$0xff] }
 0x15e   :  { %v984_v7 = vpop.permute.xlu0 %983  ;;  %v1249_v14 = vadd.f32 %v1248_v12, %v1247_v49  ;;  %v2808_v49 = vpack.c.bf16 %v2134_v19, %v2133_v62  ;;  %v2088_v12 = vld [vmem:[%s5153_s4 + $0x28] sm:$0xff]  ;;  %v2126_v62 = vld [vmem:[%s5153_s4 + $0x158] sm:$0xff]  ;;  %v2111_v19 = vld [vmem:[%s5153_s4 + $0xe0] sm:$0xff] }
 0x15f   :  { %v1129_v44 = vmul.f32 %v984_v7, %v120_v37  ;;  %v1298_v27 = vrot.slane %v1297_v13, 4  ;;  %v1273_v21 = vrot.slane %v1272_v35, 2 }
 0x161   :  { %v1324_v18 = vadd.f32 %v1323_v40, %v1129_v44  ;;  %v1044_v48 = vpop.permute.xlu1 %1043  ;;  %v1299_v11 = vadd.f32 %v1298_v27, %v1297_v13  ;;  %v1274_v61 = vadd.f32 %v1273_v21, %v1272_v35  ;;  %v2101_v35 = vld [vmem:[%s5153_s4 + $0x90] sm:$0xff] }
 0x162   :  { %v1386_v4 = vpop.permute.xlu0 %1385  ;;  %v1141_v55 = vmul.f32 %v1044_v48, %v132_v25  ;;  %v2083_v25 = vld [vmem:[%s5153_s4] sm:$0xff]  ;;  %v2085_v21 = vld [vmem:[%s5153_s4 + $0x10] sm:$0xff] }
 0x163   :  { %2909 = vrcp.f32 %v1386_v4  ;;  %v1325_v39 = vrot.slane %v1324_v18, 4  ;;  %v1300_v16 = vrot.slane %v1299_v11, 2  ;;  %v1275_v60 = vrot.slane %v1274_v61, 1 }
 0x164   :  { %2911 = vrcp.f32 %v1371_v23  ;;  %v1351_v45 = vadd.f32 %v1350_v24, %v1141_v55  ;;  %v2102_v55 = vld [vmem:[%s5153_s4 + $0x98] sm:$0xff]  ;;  %v2774_v10 = vpack.c.bf16 %v2084_v3, %v2083_v25  ;;  %v2141_v3 = vld [vmem:[%s5153_s4 + $0x1d0] sm:$0xff] }
 0x165   :  { %v1416_v31 = vpop.permute.xlu1 %1415  ;;  %v1326_v63 = vadd.f32 %v1325_v39, %v1324_v18  ;;  %v1301_v26 = vadd.f32 %v1300_v16, %v1299_v11  ;;  %v1276_v23 = vadd.f32 %v1275_v60, %v1274_v61  ;;  %v2776_v41 = vpack.c.bf16 %v2102_v55, %v2101_v35  ;;  %v2117_v16 = vld [vmem:[%s5153_s4 + $0x110] sm:$0xff]  ;;  %v2136_v61 = vld [vmem:[%s5153_s4 + $0x1a8] sm:$0xff]  ;;  %v2110_v25 = vld [vmem:[%s5153_s4 + $0xd8] sm:$0xff] }
 0x166   :  { %v1401_v59 = vpop.permute.xlu0 %1400  ;;  %v1352_v17 = vrot.slane %v1351_v45, 4  ;;  %v2094_v35 = vld [vmem:[%s5153_s4 + $0x58] sm:$0xff]  ;;  %v2125_v55 = vld [vmem:[%s5153_s4 + $0x150] sm:$0xff] }
 0x167   :  { %2913 = vrcp.f32 %v1401_v59  ;;  %v1327_v56 = vrot.slane %v1326_v63, 2  ;;  %v1302_v36 = vrot.slane %v1301_v26, 1 }
 0x168   :  { %2915 = vrcp.f32 %v1416_v31  ;;  %v1353_v58 = vadd.f32 %v1352_v17, %v1351_v45 }
 0x169   :  { %v1446_v52 = vpop.permute.xlu1 %1445  ;;  %v1328_v37 = vadd.f32 %v1327_v56, %v1326_v63  ;;  %v1303_v44 = vadd.f32 %v1302_v36, %v1301_v26  ;;  %v2086_v63 = vld [vmem:[%s5153_s4 + $0x18] sm:$0xff] }
 0x16a   :  { %v1431_v20 = vpop.permute.xlu0 %1430  ;;  %v1354_v6 = vrot.slane %v1353_v58, 2  ;;  %v2778_v56 = vpack.c.bf16 %v2086_v63, %v2085_v21  ;;  %v2095_v63 = vld [vmem:[%s5153_s4 + $0x60] sm:$0xff] }
 0x16b   :  { %2917 = vrcp.f32 %v1431_v20  ;;  %v1329_v46 = vrot.slane %v1328_v37, 1  ;;  %v2103_v20 = vld [vmem:[%s5153_s4 + $0xa0] sm:$0xff] }
 0x16c   :  { %2919 = vrcp.f32 %v1446_v52  ;;  %v1355_v29 = vadd.f32 %v1354_v6, %v1353_v58  ;;  %v2118_v58 = vld [vmem:[%s5153_s4 + $0x118] sm:$0xff]  ;;  %v2780_v26 = vpack.c.bf16 %v2104_v38, %v2103_v20  ;;  %v2812_v6 = vpack.c.bf16 %v2136_v61, %v2135_v5  ;;  %v2113_v20 = vld [vmem:[%s5153_s4 + $0xf0] sm:$0xff] }
 0x16d   :  { %v2910_v43 = vpop.eup %2909  ;;  %v1476_v34 = vpop.permute.xlu1 %1475  ;;  %v1330_v4 = vadd.f32 %v1329_v46, %v1328_v37  ;;  %v2145_v38 = vld [vmem:[%s5153_s4 + $0x1f0] sm:$0xff]  ;;  %v2146_v61 = vld [vmem:[%s5153_s4 + $0x1f8] sm:$0xff] }
 0x16e   :  { %v2912_v53 = vpop.eup %2911  ;;  %v1461_v9 = vpop.permute.xlu0 %1460  ;;  %v1489_v30 = vmul.f32 %v2910_v43, %v1195_v33  ;;  %v1356_v22 = vrot.slane %v1355_v29, 1  ;;  %v2810_v43 = vpack.c.bf16 %v2118_v58, %v2117_v16  ;;  %v2087_v33 = vld [vmem:[%s5153_s4 + $0x20] sm:$0xff]  ;;  %v2128_v16 = vld [vmem:[%s5153_s4 + $0x168] sm:$0xff] }
 0x16f   :  { %2921 = vrcp.f32 %v1461_v9  ;;  %v1483_v13 = vmul.f32 %v2912_v53, %v1168_v1  ;;  %v2119_v53 = vld [vmem:[%s5153_s4 + $0x120] sm:$0xff]  ;;  %v2120_v9 = vld [vmem:[%s5153_s4 + $0x128] sm:$0xff]  ;;  %v2106_v1 = vld [vmem:[%s5153_s4 + $0xb8] sm:$0xff]  ;;  %v2782_v60 = vpack.c.bf16 %v2088_v12, %v2087_v33  ;;  %v2832_v33 = vpack.c.bf16 %v2146_v61, %v2145_v38 }
 0x170   :  { %2923 = vrcp.f32 %v1476_v34  ;;  %v1357_v39 = vadd.f32 %v1356_v22, %v1355_v29  ;;  %v2105_v34 = vld [vmem:[%s5153_s4 + $0xb0] sm:$0xff]  ;;  %v2814_v37 = vpack.c.bf16 %v2120_v9, %v2119_v53  ;;  %v3001_v9 = vmov 0.0|0.0  }
 0x171   :  { %v2914_v57 = vpop.eup %2913  ;;  %v1573_v47 = vsel %vm1534_vm1, %v1489_v30, %v1483_v13  ;;  %v2137_v30 = vld [vmem:[%s5153_s4 + $0x1b0] sm:$0xff]  ;;  %v2784_v36 = vpack.c.bf16 %v2106_v1, %v2105_v34  ;;  %v1775_v34 = vlaneseq }
 0x172   :  { %v2916_v42 = vpop.eup %2915  ;;  %v1495_v0 = vmul.f32 %v2914_v57, %v1222_v28  ;;  %v2138_v28 = vld [vmem:[%s5153_s4 + $0x1b8] sm:$0xff]  ;;  %v2089_v57 = vld [vmem:[%s5153_s4 + $0x30] sm:$0xff] }
 0x173   :  { %v1501_v7 = vmul.f32 %v2916_v42, %v1249_v14  ;;  %v2090_v14 = vld [vmem:[%s5153_s4 + $0x38] sm:$0xff]  ;;  %v2816_v13 = vpack.c.bf16 %v2138_v28, %v2137_v30  ;;  %v2121_v29 = vld [vmem:[%s5153_s4 + $0x130] sm:$0xff]  ;;  %v1776_v1 = vshrl.u32 %v1775_v34, 7 }
 0x174   :  { %v1574_v32 = vsel %vm1536_vm2, %v1495_v0, %v1573_v47  ;;  %v2122_v42 = vld [vmem:[%s5153_s4 + $0x138] sm:$0xff]  ;;  %v2107_v0 = vld [vmem:[%s5153_s4 + $0xc0] sm:$0xff]  ;;  %v2108_v47 = vld [vmem:[%s5153_s4 + $0xc8] sm:$0xff]  ;;  %v2786_v46 = vpack.c.bf16 %v2090_v14, %v2089_v57 }
 0x175   :  { %v2918_v40 = vpop.eup %2917  ;;  %v1575_v18 = vsel %vm1538_vm3, %v1501_v7, %v1574_v32  ;;  %v2139_v7 = vld [vmem:[%s5153_s4 + $0x1c0] sm:$0xff]  ;;  %v2818_v32 = vpack.c.bf16 %v2122_v42, %v2121_v29  ;;  %v2788_v22 = vpack.c.bf16 %v2108_v47, %v2107_v0  ;;  %v1777_v30 = vsub.s32 0, %v1776_v1 }
 0x176   :  { %v2920_v51 = vpop.eup %2919  ;;  %v1507_v8 = vmul.f32 %v2918_v40, %v1276_v23  ;;  %v2140_v23 = vld [vmem:[%s5153_s4 + $0x1c8] sm:$0xff]  ;;  %v2091_v40 = vld [vmem:[%s5153_s4 + $0x40] sm:$0xff]  ;;  %v1785_v28 = vsub.s32 2, %v1776_v1  ;;  %v1789_v57 = vsub.s32 3, %v1776_v1 }
 0x177   :  { %v1513_v27 = vmul.f32 %v2920_v51, %v1303_v44  ;;  %v2092_v44 = vld [vmem:[%s5153_s4 + $0x48] sm:$0xff]  ;;  %v2820_v51 = vpack.c.bf16 %v2140_v23, %v2139_v7 }
 0x178   :  { %v1576_v48 = vsel %vm1540_vm4, %v1507_v8, %v1575_v18  ;;  %v2123_v8 = vld [vmem:[%s5153_s4 + $0x140] sm:$0xff]  ;;  %v2109_v18 = vld [vmem:[%s5153_s4 + $0xd0] sm:$0xff] }
 0x179   :  { %v2922_v24 = vpop.eup %2921  ;;  %v1577_v31 = vsel %vm1542_vm5, %v1513_v27, %v1576_v48  ;;  %v2124_v27 = vld [vmem:[%s5153_s4 + $0x148] sm:$0xff]  ;;  %v2790_v48 = vpack.c.bf16 %v2092_v44, %v2091_v40 }
 0x17a   :  { %v2924_v11 = vpop.eup %2923  ;;  %v1519_v45 = vmul.f32 %v2922_v24, %v1330_v4  ;;  %v2142_v4 = vld [vmem:[%s5153_s4 + $0x1d8] sm:$0xff]  ;;  %v2822_v15 = vpack.c.bf16 %v2124_v27, %v2123_v8  ;;  %v2792_v24 = vpack.c.bf16 %v2110_v25, %v2109_v18  ;;  %v2297_v40 = vld [vmem:[%s5155_s6 + $0x8] sm:$0xff] }
 0x17b   :  { %v1525_v59 = vmul.f32 %v2924_v11, %v1357_v39  ;;  %v2824_v39 = vpack.c.bf16 %v2142_v4, %v2141_v3  ;;  %v2112_v11 = vld [vmem:[%s5153_s4 + $0xe8] sm:$0xff]  ;;  %v2298_v3 = vld [vmem:[%s5155_s6 + $0x10] sm:$0xff]  ;;  %v2299_v4 = vld [vmem:[%s5155_s6 + $0x18] sm:$0xff] }
 0x17c   :  { %v1578_v17 = vsel %vm1544_vm6, %v1519_v45, %v1577_v31  ;;  %v2143_v45 = vld [vmem:[%s5153_s4 + $0x1e0] sm:$0xff]  ;;  %v2794_v31 = vpack.c.bf16 %v2094_v35, %v2093_v50  ;;  %v2301_v50 = vld [vmem:[%s5155_s6 + $0x28] sm:$0xff] }
 0x17d   :  { %v1579_v52 = vsel %vm1546_vm7, %v1525_v59, %v1578_v17  ;;  %v2144_v59 = vld [vmem:[%s5153_s4 + $0x1e8] sm:$0xff] }
 0x17e   :  { %1931 = vmatmul.mubr.f32.vlgmr.msra.gmra.mrb[0].mxu0 %v1579_v52  ;;  %2073 = vmatmul.mubr.f32.vlgmr.msra.gmra.mrb[0].mxu1 %v1579_v52  ;;  %v2828_v21 = vpack.c.bf16 %v2144_v59, %v2143_v45  ;;  %v2096_v17 = vld [vmem:[%s5153_s4 + $0x68] sm:$0xff]  ;;  %v2114_v52 = vld [vmem:[%s5153_s4 + $0xf8] sm:$0xff]  ;;  %v2306_v45 = vld [vmem:[%s5155_s6 + $0x50] sm:$0xff] }
 0x17f   :  { %2775 = vmatpush3.bf16.msra.mxu0 %v2774_v10  ;;  %2807 = vmatpush3.bf16.msra.mxu1 %v2806_v54  ;;  %v2826_v10 = vpack.c.bf16 %v2126_v62, %v2125_v55  ;;  %v2796_v54 = vpack.c.bf16 %v2112_v11, %v2111_v19  ;;  %v2800_v5 = vpack.c.bf16 %v2114_v52, %v2113_v20  ;;  %v2304_v62 = vld [vmem:[%s5155_s6 + $0x40] sm:$0xff]  ;;  %v2305_v19 = vld [vmem:[%s5155_s6 + $0x48] sm:$0xff]  ;;  %v2307_v59 = vld [vmem:[%s5155_s6 + $0x58] sm:$0xff] }
 0x180   :  { %2777 = vmatprep.subr.bf16.mxu0 %v2776_v41  ;;  %2809 = vmatprep.subr.bf16.mxu1 %v2808_v49  ;;  %v2127_v41 = vld [vmem:[%s5153_s4 + $0x160] sm:$0xff]  ;;  %v2798_v49 = vpack.c.bf16 %v2096_v17, %v2095_v63  ;;  %v2849_v11 = vpack.c.bf16 %v2305_v19, %v2304_v62  ;;  %v2310_v63 = vld [vmem:[%s5155_s6 + $0x70] sm:$0xff]  ;;  %v2311_v17 = vld [vmem:[%s5155_s6 + $0x78] sm:$0xff] }
 0x181   :  { %v2830_v58 = vpack.c.bf16 %v2128_v16, %v2127_v41  ;;  %v2858_v41 = vpack.c.bf16 %v2311_v17, %v2310_v63 }
 0x183   :  { %2779 = vmatpush3.bf16.msra.mxu0 %v2778_v56  ;;  %2811 = vmatpush3.bf16.msra.mxu1 %v2810_v43  ;;  %v2097_v56 = vld [vmem:[%s5153_s4 + $0x70] sm:$0xff]  ;;  %v2098_v43 = vld [vmem:[%s5153_s4 + $0x78] sm:$0xff] }
 0x184   :  { %2781 = vmatprep.subr.bf16.mxu0 %v2780_v26  ;;  %2813 = vmatprep.subr.bf16.mxu1 %v2812_v6  ;;  %v2802_v12 = vpack.c.bf16 %v2098_v43, %v2097_v56  ;;  %v2129_v26 = vld [vmem:[%s5153_s4 + $0x170] sm:$0xff]  ;;  %v2130_v6 = vld [vmem:[%s5153_s4 + $0x178] sm:$0xff] }
 0x185   :  { %v2834_v53 = vpack.c.bf16 %v2130_v6, %v2129_v26  ;;  %v2400_v6 = vld [vmem:[%s5157_s8] sm:$0xff] }
 0x187   :  { %2783 = vmatpush3.bf16.msra.mxu0 %v2782_v60  ;;  %2815 = vmatpush3.bf16.msra.mxu1 %v2814_v37  ;;  %v1773_v60 = vld [vmem:[%s5152_s3] sm:$0xf]  ;;  %v1781_v37 = vsub.s32 1, %v1776_v1 }
 0x188   :  { %2785 = vmatprep.subr.bf16.mxu0 %v2784_v36  ;;  %2817 = vmatprep.subr.bf16.mxu1 %v2816_v13  ;;  %v1778_v14 = vrot.slane %v1773_v60, %v1777_v30  ;;  %v1786_v36 = vrot.slane %v1773_v60, %v1785_v28  ;;  %v1790_v29 = vrot.slane %v1773_v60, %v1789_v57 }
 0x189   :  { %v1782_v13 = vrot.slane %v1773_v60, %v1781_v37 }
 0x18b   :  { %2787 = vmatpush3.bf16.msra.mxu0 %v2786_v46  ;;  %2819 = vmatpush3.bf16.msra.mxu1 %v2818_v32  ;;  %v2296_v32 = vld [vmem:[%s5155_s6] sm:$0xff] }
 0x18c   :  { %2789 = vmatprep.subr.bf16.mxu0 %v2788_v22  ;;  %2821 = vmatprep.subr.bf16.mxu1 %v2820_v51  ;;  %v2837_v27 = vpack.c.bf16 %v2297_v40, %v2296_v32 }
 0x18f   :  { %2791 = vmatpush3.bf16.msra.mxu0 %v2790_v48  ;;  %2823 = vmatpush3.bf16.msra.mxu1 %v2822_v15  ;;  %v2840_v48 = vpack.c.bf16 %v2299_v4, %v2298_v3  ;;  %v2300_v15 = vld [vmem:[%s5155_s6 + $0x20] sm:$0xff] }
 0x190   :  { %2793 = vmatprep.subr.bf16.mxu0 %v2792_v24  ;;  %2825 = vmatprep.subr.bf16.mxu1 %v2824_v39  ;;  %v2843_v35 = vpack.c.bf16 %v2301_v50, %v2300_v15  ;;  %v2302_v24 = vld [vmem:[%s5155_s6 + $0x30] sm:$0xff]  ;;  %v2303_v39 = vld [vmem:[%s5155_s6 + $0x38] sm:$0xff] }
 0x191   :  { %v2846_v55 = vpack.c.bf16 %v2303_v39, %v2302_v24 }
 0x193   :  { %2795 = vmatpush3.bf16.msra.mxu0 %v2794_v31  ;;  %2827 = vmatpush3.bf16.msra.mxu1 %v2826_v10  ;;  %v2852_v31 = vpack.c.bf16 %v2307_v59, %v2306_v45  ;;  %v2308_v10 = vld [vmem:[%s5155_s6 + $0x60] sm:$0xff] }
 0x194   :  { %2797 = vmatprep.subr.bf16.mxu0 %v2796_v54  ;;  %2829 = vmatprep.subr.bf16.mxu1 %v2828_v21  ;;  %v2309_v54 = vld [vmem:[%s5155_s6 + $0x68] sm:$0xff] }
 0x195   :  { %v2855_v21 = vpack.c.bf16 %v2309_v54, %v2308_v10 }
 0x197   :  { %2799 = vmatpush3.bf16.msra.mxu0 %v2798_v49  ;;  %2831 = vmatpush3.bf16.msra.mxu1 %v2830_v58  ;;  %v2456_v58 = vld [vmem:[%s5154_s5] ss:$0 sm:$0xff]  ;;  %s3003_s5 = smov [#allocation4]  }
 0x198   :  { %2801 = vmatprep.subr.bf16.mxu0 %v2800_v5  ;;  %2833 = vmatprep.subr.bf16.mxu1 %v2832_v33  ;;  %v2457_v33 = vld [vmem:[%s5156_s7] ss:$0 sm:$0xff]  ;;  %s2431_s13 = sshll.u32 %s3003_s5, 4  ;;  %s3004_s7 = smov [#allocation2]   ;;  %s2432_s13 = int_to_ptr.vmem [resolvable:$true] %s2431_s13 }
 0x199   :  { %s2421_s14 = sshll.u32 %s3004_s7, 4  ;;  %s2929_s15 = scalar_lea.vmem %s2432_s13, 128  ;;  %s2422_s14 = int_to_ptr.vmem [resolvable:$true] %s2421_s14 }
 0x19a   :  { %p2930_p0 = scmp.ne.s32.totalorder %s2432_s13, %s2929_s15  ;;  %p2934_p1 = scmp.lt.s32.totalorder %s2432_s13, %s2432_s13 }
 0x19b   :  { %2803 = vmatpush3.bf16.msra.mxu0 %v2802_v12  ;;  %2835 = vmatpush3.bf16.msra.mxu1 %v2834_v53  ;;  %p2935_p2 = scmp.lt.s32.totalorder %s2929_s15, %s2929_s15 }
 0x19c   :  { %2836 = vmatprep.subr.bf16.mxu0 %v3001_v9 }
 0x19d   :  { %p2936_p3 = por %p2935_p2, %p2934_p1 }
 0x19f   :  { %p2937_p4 = pnand %p2936_p3, %p2930_p0 }
 0x251   :  { %v1932_v42 = vpop.f32.mrb[0].mxu0  ;;  %v2074_v0 = vpop.f32.mrb[0].mxu1 }
 0x252   :  { %v2860_v47 = vadd.f32 %v1932_v42, %v1778_v14  ;;  %v2862_v7 = vadd.f32 %v2074_v0, %v1786_v36  ;;  %v1934_v23 = vpop.f32.mrb[1].mxu0  ;;  %v2076_v46 = vpop.f32.mrb[1].mxu1 }
 0x253   :  { %v2861_v44 = vadd.f32 %v1934_v23, %v1782_v13  ;;  %v2863_v22 = vadd.f32 %v2076_v46, %v1790_v29 }
 0x254   :  { %v2079_v18 = vmax.f32 %v2860_v47, 0.0  ;;  %v2081_v25 = vmax.f32 %v2862_v7, 0.0 }
 0x255   :  { %v2080_v51 = vmax.f32 %v2861_v44, 0.0  ;;  %v2082_v8 = vmax.f32 %v2863_v22, 0.0 }
 0x257   :  { %2218 = vmatprep.mubr.f32.mxu0 %v2080_v51  ;;  %2288 = vmatprep.mubr.f32.mxu1 %v2082_v8 }
 0x258   :  { %2219 = vmatmul.mubr.f32.vlgmr.msra.gmra.mrb[2].mxu0 %v2079_v18  ;;  %2289 = vmatmul.mubr.f32.vlgmr.msra.gmra.mrb[2].mxu1 %v2081_v25 }
 0x259   :  { %2838 = vmatpush3.bf16.msra.mxu0 %v2837_v27  ;;  %2577 = vmatprep.mubr.msk.f32.mxu0 %vm3002_vm8, %v3000_v2 }
 0x25a   :  { %2839 = vmatprep.subr.bf16.mxu0 %v3001_v9 }
 0x25d   :  { %2841 = vmatpush3.bf16.msra.mxu0 %v2840_v48 }
 0x25e   :  { %2842 = vmatprep.subr.bf16.mxu0 %v3001_v9 }
 0x261   :  { %2844 = vmatpush3.bf16.msra.mxu0 %v2843_v35 }
 0x262   :  { %2845 = vmatprep.subr.bf16.mxu0 %v3001_v9 }
 0x265   :  { %2847 = vmatpush3.bf16.msra.mxu0 %v2846_v55 }
 0x266   :  { %2848 = vmatprep.subr.bf16.mxu0 %v3001_v9 }
 0x269   :  { %2850 = vmatpush3.bf16.msra.mxu0 %v2849_v11 }
 0x26a   :  { %2851 = vmatprep.subr.bf16.mxu0 %v3001_v9 }
 0x26d   :  { %2853 = vmatpush3.bf16.msra.mxu0 %v2852_v31 }
 0x26e   :  { %2854 = vmatprep.subr.bf16.mxu0 %v3001_v9 }
 0x271   :  { %2856 = vmatpush3.bf16.msra.mxu0 %v2855_v21 }
 0x272   :  { %2857 = vmatprep.subr.bf16.mxu0 %v3001_v9 }
 0x275   :  { %2859 = vmatpush3.bf16.msra.mxu0 %v2858_v41 }
 0x32b   :  { %v2490_v49 = vpop.f32.mrb[2].mxu0  ;;  %v2525_v16 = vpop.f32.mrb[2].mxu1 }
 0x32c   :  { %v2491_v20 = vpop.f32.mrb[3].mxu0  ;;  %v2526_v52 = vpop.f32.mrb[3].mxu1 }
 0x32d   :  { %v2492_v38 = vadd.f32 %v2491_v20, %v2490_v49  ;;  %v2527_v5 = vadd.f32 %v2526_v52, %v2525_v16 }
 0x32f   :  { %v2221_v61 = vadd.f32 %v2492_v38, %v2456_v58 }
 0x331   :  { %v2291_v56 = vadd.f32 %v2527_v5, %v2221_v61 }
 0x333   :  { %v2295_v43 = vmax.f32 %v2291_v56, 0.0  ;;  %2294 = vst [vmem:[#allocation4] sm:$0xff] %v2291_v56 }
 0x335   :  { %2578 = vmatmul.mubr.f32.vlgmr.msra.gmra.mrb[4].mxu0 %v2295_v43 }
 0x408   :  { %v2385_v2 = vpop.f32.mrb[4].mxu0 }
 0x409   :  { %v2386_v12 = vadd.f32 %v2457_v33, %v2385_v2  ;;  %v2579_v26 = vpop.f32.mrb[5].mxu0 }
 0x40b   :  { %2389 = vst [vmem:[#allocation2] sm:$0xff] %v2386_v12  ;;  %2390 = vmax.xlane.f32.xlu0 %v2386_v12  ;;  %v2401_v53 = vmul.f32 %v2400_v6, %v2386_v12 }
 0x40f   :  { %2402 = vadd.xlane.f32.xlu0 %v2401_v53 }
 0x498   :  { %v2391_v9 = vpop.xlane.xlu0 %2390 }
 0x499   :  { %v2392_v34 = vsub.f32 %v2386_v12, %v2391_v9 }
 0x49b   :  { %v2393_v1 = vmul.f32 1.442695, %v2392_v34 }
 0x49d   :  { %2925 = vpow2.f32 %v2393_v1 }
 0x4a7   :  { %v2926_v30 = vpop.eup %2925 }
 0x4a8   :  { %2395 = vadd.xlane.f32.xlu1 %v2926_v30 }
 0x4a9   :  { %2940 = shalt.err (!%p2937_p4)
}
 0x4aa   :  { %s2941_s17 = scalar_lea.hbm %s5159_s10, 128 }
 0x4ab   :  { %p2942_p5 = scmp.ne.s32.totalorder %s5159_s10, %s2941_s17  ;;  %p2945_p6 = scmp.lt.u32.totalorder %s2941_s17, %s5159_s10 }
 0x4ad   :  { %p2947_p7 = pnand %p2945_p6, %p2942_p5 }
 0x4af   :  { %2950 = shalt.err (!%p2947_p7)
}
 0x4b0   :  { %2434 = dma.vmem_to_hbm [thread:$0]  %s2432_s13, 128, %s5159_s10, [#allocation5]  }
 0x4b1   :  { %s2951_s4 = scalar_lea.vmem %s2422_s14, 128  ;;  %p2956_p9 = scmp.lt.s32.totalorder %s2422_s14, %s2422_s14 }
 0x4b2   :  { %p2952_p8 = scmp.ne.s32.totalorder %s2422_s14, %s2951_s4  ;;  %p2957_p10 = scmp.lt.s32.totalorder %s2951_s4, %s2951_s4 }
 0x4b4   :  { %p2958_p11 = por %p2957_p10, %p2956_p9 }
 0x4b6   :  { %p2959_p12 = pnand %p2958_p11, %p2952_p8 }
 0x4b8   :  { %2962 = shalt.err (!%p2959_p12)
}
 0x4b9   :  { %s2963_s25 = scalar_lea.hbm %s5158_s9, 128 }
 0x4ba   :  { %p2964_p13 = scmp.ne.s32.totalorder %s5158_s9, %s2963_s25  ;;  %p2967_p0 = scmp.lt.u32.totalorder %s2963_s25, %s5158_s9 }
 0x4bc   :  { %p2969_p1 = pnand %p2967_p0, %p2964_p13 }
 0x4be   :  { %2972 = shalt.err (!%p2969_p1)
}
 0x4bf   :  { %2424 = dma.vmem_to_hbm [thread:$0]  %s2422_s14, 128, %s5158_s9, [#allocation3]   ;;  %v2403_v14 = vpop.xlane.xlu0 %2402  ;;  %vm2413_vm9 = vcmask 0  }
 0x4c0   :  { %s3005_s30 = smov [#allocation6]  }
 0x4c1   :  { %s2441_s6 = sshll.u32 %s3005_s30, 4  ;;  %s2442_s6 = int_to_ptr.vmem [resolvable:$true] %s2441_s6 }
 0x4c2   :  { %s2973_s9 = scalar_lea.vmem %s2442_s6, 16  ;;  %s2977_s12 = scalar_lea.vmem %s2442_s6, 32 }
 0x4c3   :  { %p2974_p2 = scmp.ne.s32.totalorder %s2442_s6, %s2973_s9  ;;  %p2978_p3 = scmp.lt.s32.totalorder %s2442_s6, %s2442_s6 }
 0x4c4   :  { %p2979_p4 = scmp.lt.s32.totalorder %s2977_s12, %s2973_s9 }
 0x4c6   :  { %p2980_p5 = por %p2979_p4, %p2978_p3 }
 0x4c8   :  { %p2981_p6 = pnand %p2980_p5, %p2974_p2 }
 0x535   :  { %v2396_v28 = vpop.xlane.xlu1 %2395 }
 0x536   :  { %2927 = vlog2.f32 %v2396_v28 }
 0x540   :  { %v2928_v60 = vpop.eup %2927 }
 0x541   :  { %v2398_v37 = vmul.f32 0.6931472, %v2928_v60 }
 0x543   :  { %v2399_v57 = vadd.f32 %v2398_v37, %v2391_v9 }
 0x545   :  { %v2404_v36 = vsub.f32 %v2399_v57, %v2403_v14 }
 0x547   :  { %v2405_v13 = vrot.slane %v2404_v36, 4 }
 0x549   :  { %v2406_v29 = vadd.f32 %v2405_v13, %v2404_v36 }
 0x54b   :  { %v2407_v42 = vrot.slane %v2406_v29, 2 }
 0x54d   :  { %v2408_v0 = vadd.f32 %v2407_v42, %v2406_v29 }
 0x54f   :  { %v2409_v47 = vrot.slane %v2408_v0, 1 }
 0x551   :  { %v2410_v7 = vadd.f32 %v2409_v47, %v2408_v0 }
 0x553   :  { %v2412_v23 = vmul.f32 0.125, %v2410_v7 }
 0x555   :  { %2414 = vst.msk [vmem:[#allocation6] sm:$0x1] %vm2413_vm9, %v2412_v23 }
 0x556   :  { %2984 = shalt.err (!%p2981_p6)
}
 0x557   :  { %s2985_s5 = scalar_lea.hbm %s5160_s11, 16 }
 0x558   :  { %p2986_p7 = scmp.ne.s32.totalorder %s5160_s11, %s2985_s5  ;;  %p2989_p8 = scmp.lt.u32.totalorder %s2985_s5, %s5160_s11 }
 0x55a   :  { %p2991_p9 = pnand %p2989_p8, %p2986_p7 }
 0x55c   :  { %2994 = shalt.err (!%p2991_p9)
}
 0x55d   :  { %2444 = dma.vmem_to_hbm [thread:$0]  %s2442_s6, 16, %s5160_s11, [#allocation5]  }
 0x55e   :  { %2995 = dma.done.wait [#allocation3], 128  }
 0x55f   :  { %2996 = vsyncadd [#allocation3], 4294967168 }
 0x560   :  { %2997 = dma.done.wait [#allocation5], 144  }
 0x561   :  { %2998 = vsyncadd [#allocation5], 4294967152 }
 0x562   :  { %2454 = vsyncpa [#allocation3], 1 }
 0x563   :  { %2455 = vsyncpa [#allocation5], 1 }

</bundles_post_ra>
